<compile_context>
chip_gen: v5e
topology: v5e:2x2
jax: 0.10.0
libtpu: 0.0.40
codegen_flags: <defaults>
</compile_context>

<pallas_src>
import jax
import jax.numpy as jnp
from jax.experimental import pallas as pl
from jax.experimental.pallas import tpu as pltpu

_EPS = 1e-12
_NEG_LOG_EPS = 27.631021115928547   # -log(1e-12): focal log(min(pt+eps,1)) saturation
_FOCAL_ALPHA = 0.5                  # NormalizedFocalLossSigmoid(alpha=0.5, gamma=2)
_CLICK_ALPHA = 0.99                 # ClickLoss(alpha=0.99, beta=0.01)
_CLICK_BETA = 0.01
_IGNORE = -1.0
_ROW_ALIGN = 32                     # int8 label native sublane tile -> rt multiple of 32
_MAX_ROWS_CAP = 2048                # target tile height (rows of 128 lanes)
_VMEM_LIMIT_BYTES = 48 << 20        # explicit scoped-VMEM request (< 64 MiB v7x physical)
_VMEM_STREAM_BUDGET = 30 << 20      # sizing target: double-buffered streams + f32 scratch


def _cdiv(a, b):
    return -(-a // b)


def _round_up(a, b):
    return _cdiv(a, b) * b


def diversity_loss(latent_preds, label, click_map, *, max_tile_rows=None):
    B, K, H, W = latent_preds.shape
    C = click_map.shape[1]
    assert label.shape == (B, 1, H, W)
    assert click_map.shape[0] == B and click_map.shape[-2:] == (H, W)
    assert K <= 128                         # per-k stats are packed along one lane row

    HW = H * W
    P = _cdiv(HW, 128)                      # lane-dense rows after flattening

    # ---- adaptive, VMEM-budgeted spatial tiling ----
    bytes_per_row = 128 * (2 * latent_preds.dtype.itemsize    # pred, double buffered
                           + 2 * 1                             # label int8, double buffered
                           + 2 * C * click_map.dtype.itemsize  # click, double buffered
                           + 3 * 4)                            # sign/swf/wmask f32 scratch
    max_rows = (_VMEM_STREAM_BUDGET // bytes_per_row) // _ROW_ALIGN * _ROW_ALIGN
    max_rows = max(_ROW_ALIGN, min(_MAX_ROWS_CAP, max_rows))
    if max_tile_rows is not None:           # test / tuning override
        max_rows = max(_ROW_ALIGN, min(max_rows, (max_tile_rows // _ROW_ALIGN) * _ROW_ALIGN))

    S = _cdiv(P, max_rows)                  # spatial tiles per plane
    rt = _round_up(_cdiv(P, S), _ROW_ALIGN)
    # v7x megacore: if B alone gives < 2 parallel work items, split the spatial axis.
    S_OUT = 2 if (B < 2 and S >= 2) else 1
    S_IN = _cdiv(S, S_OUT)
    S = S_OUT * S_IN
    p_pad = S * rt
    l_pad = p_pad * 128
    pad_needed = (l_pad != HW)

    # ---- input prep ----
    # label -> int8 sign codes {+1: fg, -1: bg, 0: ignore}; also serves as the sign map.
    one_hot = label > 0.5
    valid = label != _IGNORE
    code = jnp.where(valid, jnp.where(one_hot, 1, -1), 0).astype(jnp.int8)

    def prep(x, pad_val):
        xb, xc = x.shape[0], x.shape[1]
        flat = x.reshape(xb, xc, HW)
        if pad_needed:
            flat = jnp.pad(flat, ((0, 0), (0, 0), (0, l_pad - HW)),
                           constant_values=pad_val)
        return flat.reshape(xb, xc, p_pad, 128)

    pred_r = prep(latent_preds, 0.0)        # pad content is don't-care (masked by sign=0)
    code_r = prep(code, 0)                  # pad == 0 == ignore
    click_r = prep(click_map, 0.0)          # padded weight-map entries masked in-kernel

    def kernel(pred_ref, code_ref, click_ref, out_ref,
               sign_ref, swf_ref, wmask_ref, fr_acc, bs_acc, cn_acc, sw_acc):
        so = pl.program_id(1)               # spatial outer tile (megacore split)
        si = pl.program_id(2)               # spatial inner tile
        k = pl.program_id(3)                # latent prediction index

        def rsum8(x):                       # (rt,128) -> (8,128) sublane-group partial sums
            return jnp.sum(x.reshape(rt // 8, 8, 128), axis=0)

        # ---- reset per-k accumulators on the first spatial tile of this (b, so) ----
        @pl.when(si == 0)
        def _init_k():
            z = jnp.zeros((8, 128), jnp.float32)
            fr_acc[k] = z
            bs_acc[k] = z
            cn_acc[k] = z

        @pl.when((si == 0) & (k == 0))
        def _init_b():
            sw_acc[...] = jnp.zeros_like(sw_acc)

        # ---- k-invariant per-tile work, done once at k == 0 and cached in VMEM ----
        @pl.when(k == 0)
        def _hoist():
            code_f = code_ref[0, 0].astype(jnp.float32)    # {-1, 0, +1}; 0 = ignore/pad
            swf = code_f * code_f                          # 1 on valid pixels, else 0
            sign_ref[...] = code_f
            swf_ref[...] = swf
            click = click_ref[0].astype(jnp.float32)       # (C, rt, 128)
            wmap = jnp.max(click, axis=0) * _CLICK_ALPHA + _CLICK_BETA
            if pad_needed:                                 # static branch
                row = jax.lax.broadcasted_iota(jnp.int32, (rt, 128), 0)
                lane = jax.lax.broadcasted_iota(jnp.int32, (rt, 128), 1)
                s_glob = so * S_IN + si
                in_b = ((s_glob * rt + row) * 128 + lane) < HW
                wmap = wmap * in_b.astype(jnp.float32)
            sw_acc[0] = sw_acc[0] + rsum8(swf)             # sw_sum partials (k-invariant)
            sw_acc[1] = sw_acc[1] + rsum8(wmap)            # wden partials   (k-invariant)
            wmask_ref[...] = wmap * swf                    # pre-masked map (click numerator)

        # ---- hot loop: fused focal / BCE-with-logits, vectorized accumulation ----
        pred = pred_ref[0, 0].astype(jnp.float32)
        sign = sign_ref[...]
        swf = swf_ref[...]

        sgn = pred * sign                                  # +pred fg, -pred bg, 0 at ignore
        e = jnp.exp(-jnp.abs(sgn))                         # in (0, 1], never overflows
        d = 1.0 + e
        r = pl.reciprocal(d, approx=True)
        r = r * (2.0 - d * r)                              # one Newton step (~1e-7 rel err)
        ompt = jnp.where(sgn >= 0, e * r, r) * swf         # (1 - pt), zeroed at ignore/pad
        nlp = jnp.log1p(e) - jnp.minimum(sgn, 0.0)         # -log(pt) (exact softplus form)
        nlp_f = jnp.minimum(nlp, _NEG_LOG_EPS)             # focal: log(min(pt + eps, 1))
        beta = ompt * ompt                                 # gamma == 2

        fr_acc[k] = fr_acc[k] + rsum8(beta * nlp_f)
        bs_acc[k] = bs_acc[k] + rsum8(beta)
        cn_acc[k] = cn_acc[k] + rsum8(nlp * wmask_ref[...])

        # ---- finalize: one lane-dense (8,128) packed tile per (b, s_outer) ----
        @pl.when((si == S_IN - 1) & (k == K - 1))
        def _finalize():
            row8 = jax.lax.broadcasted_iota(jnp.int32, (8, 128), 0)
            lane8 = jax.lax.broadcasted_iota(jnp.int32, (8, 128), 1)
            tile = jnp.where(row8 == 3, jnp.sum(sw_acc[0]),
                             jnp.where(row8 == 4, jnp.sum(sw_acc[1]), jnp.float32(0.0)))
            for j in range(K):                             # K is static & small
                at_j = lane8 == j
                tile = jnp.where(at_j & (row8 == 0), jnp.sum(fr_acc[j]), tile)
                tile = jnp.where(at_j & (row8 == 1), jnp.sum(bs_acc[j]), tile)
                tile = jnp.where(at_j & (row8 == 2), jnp.sum(cn_acc[j]), tile)
            out_ref[0, 0] = tile

    packed = pl.pallas_call(
        kernel,
        out_shape=jax.ShapeDtypeStruct((B, S_OUT, 8, 128), jnp.float32),
        grid_spec=pltpu.PrefetchScalarGridSpec(
            num_scalar_prefetch=0,
            grid=(B, S_OUT, S_IN, K),       # k innermost: label/click tiles stay DMA-resident
            in_specs=[
                pl.BlockSpec((1, 1, rt, 128), lambda b, so, si, k: (b, k, so * S_IN + si, 0)),
                pl.BlockSpec((1, 1, rt, 128), lambda b, so, si, k: (b, 0, so * S_IN + si, 0)),
                pl.BlockSpec((1, C, rt, 128), lambda b, so, si, k: (b, 0, so * S_IN + si, 0)),
            ],
            out_specs=pl.BlockSpec((1, 1, 8, 128), lambda b, so, si, k: (b, so, 0, 0)),
            scratch_shapes=[
                pltpu.VMEM((rt, 128), jnp.float32),    # sign map (+/-1, 0), cached at k == 0
                pltpu.VMEM((rt, 128), jnp.float32),    # valid-pixel mask
                pltpu.VMEM((rt, 128), jnp.float32),    # swf-masked weight map
                pltpu.VMEM((K, 8, 128), jnp.float32),  # focal numerator partial sums
                pltpu.VMEM((K, 8, 128), jnp.float32),  # beta partial sums
                pltpu.VMEM((K, 8, 128), jnp.float32),  # click numerator partial sums
                pltpu.VMEM((2, 8, 128), jnp.float32),  # [sw_sum, wden] partial sums
            ]),
        compiler_params=pltpu.CompilerParams(
            dimension_semantics=("parallel", "parallel", "arbitrary", "arbitrary"),
            vmem_limit_bytes=_VMEM_LIMIT_BYTES),
    )(pred_r, code_r, click_r)

    stats = jnp.sum(packed, axis=1)         # combine per-core spatial partials (all linear)
    fraw = stats[:, 0, :K]                  # (B, K) raw focal numerators
    bsum = stats[:, 1, :K]                  # (B, K) beta sums
    cnum = stats[:, 2, :K]                  # (B, K) click numerators
    sw_sum = stats[:, 3, 0]                 # (B,)
    wden = stats[:, 4, 0]                   # (B,)

    # tiny scalar combine (plain JAX glue, matches the PyTorch forward)
    mult = jax.lax.stop_gradient(sw_sum[:, None] / (bsum + _EPS))   # detach_delimeter=True
    focal = _FOCAL_ALPHA * fraw * mult / (sw_sum[:, None] + _EPS)   # (B, K)
    div_loss_min = jnp.min(focal, axis=1)
    click_loss = jnp.sum(cnum) / jnp.sum(wden)       # == sum_k [sum_b num / sum_b wden]
    return jnp.mean(div_loss_min) + click_loss


def _reference(latent_preds, label, click_map):
    """Pure-JAX transcription of the PyTorch forward, for correctness check."""
    def focal_one(pred, lab):
        sw = lab != _IGNORE
        swf = sw.astype(jnp.float32)
        p = jax.nn.sigmoid(pred)
        alpha = jnp.where(lab > 0.5, _FOCAL_ALPHA * swf, (1.0 - _FOCAL_ALPHA) * swf)
        pt = jnp.where(sw, 1.0 - jnp.abs(lab - p), jnp.ones_like(p))
        beta = (1.0 - pt) ** 2
        sw_sum = jnp.sum(swf, axis=(-2, -1), keepdims=True)
        beta_sum = jnp.sum(beta, axis=(-2, -1), keepdims=True)
        beta = beta * (sw_sum / (beta_sum + _EPS))
        loss = -alpha * beta * jnp.log(jnp.minimum(pt + _EPS, 1.0))
        loss = loss * swf
        bsum = jnp.sum(swf, axis=(1, 2, 3))
        return jnp.sum(loss, axis=(1, 2, 3)) / (bsum + _EPS)

    def click_one(pred, lab, cmap):
        sw = lab != _IGNORE
        swf = sw.astype(jnp.float32)
        lab0 = jnp.where(sw, lab, 0.0)
        loss = jnp.maximum(pred, 0.0) - pred * lab0 + jnp.log1p(jnp.exp(-jnp.abs(pred)))
        loss = loss * swf
        wm = jnp.max(cmap, axis=1, keepdims=True) * _CLICK_ALPHA + _CLICK_BETA
        return jnp.sum(loss * wm) / jnp.sum(wm)

    K = latent_preds.shape[1]
    div, click = [], 0.0
    for i in range(K):
        sp = latent_preds[:, i:i + 1]
        div.append(focal_one(sp, label)[:, None])
        click = click + click_one(sp, label, click_map)
    div = jnp.concatenate(div, axis=1)
    return jnp.mean(jnp.min(div, axis=1)) + click


if __name__ == "__main__":
    key = jax.random.PRNGKey(0)

    def make_case(k, B, K, H, W, C):
        k1, k2, k3, k4 = jax.random.split(k, 4)
        preds = jax.random.normal(k1, (B, K, H, W), jnp.float32) * 2.0
        lab01 = (jax.random.uniform(k2, (B, 1, H, W)) > 0.5).astype(jnp.float32)
        ignore = jax.random.uniform(k3, (B, 1, H, W)) < 0.1
        lab = jnp.where(ignore, _IGNORE, lab01)
        clicks = jax.random.uniform(k4, (B, C, H, W), dtype=jnp.float32)
        return preds, lab, clicks

    ka, kb, kc, kd = jax.random.split(key, 4)
    cases = (
        (ka, (2, 3, 16, 16, 2), None),   # tiny, lane-padding + mask path
        (kb, (2, 3, 13, 17, 3), None),   # odd spatial size -> padding + mask path
        (kc, (2, 2, 64, 64, 2), None),   # HW == rt*128 exactly -> zero-copy / no-mask path
        (kd, (1, 2, 72, 72, 2), 32),     # B == 1, multi-tile -> spatial megacore split path
    )
    for kk, (B, K, H, W, C), mrows in cases:
        preds, lab, clicks = make_case(kk, B, K, H, W, C)
        out = jax.block_until_ready(diversity_loss(preds, lab, clicks, max_tile_rows=mrows))
        ref = _reference(preds, lab, clicks)
        assert jnp.allclose(out, ref, rtol=1e-4, atol=1e-5), (out, ref, (B, K, H, W, C))
    print("KERNEL_OK")
</pallas_src>

<mosaic_0001>
module attributes {stable_mosaic.version = 11 : i64} {
  func.func @kernel(%arg0: i32, %arg1: i32, %arg2: i32, %arg3: i32, %arg4: memref<1x1x32x128xf32, #tpu.memory_space<vmem>>, %arg5: memref<1x1x32x128xi8, #tpu.memory_space<vmem>>, %arg6: memref<1x2x32x128xf32, #tpu.memory_space<vmem>>, %arg7: memref<1x1x8x128xf32, #tpu.memory_space<vmem>>, %arg8: memref<32x128xf32, #tpu.memory_space<vmem>>, %arg9: memref<32x128xf32, #tpu.memory_space<vmem>>, %arg10: memref<32x128xf32, #tpu.memory_space<vmem>>, %arg11: memref<3x8x128xf32, #tpu.memory_space<vmem>>, %arg12: memref<3x8x128xf32, #tpu.memory_space<vmem>>, %arg13: memref<3x8x128xf32, #tpu.memory_space<vmem>>, %arg14: memref<2x8x128xf32, #tpu.memory_space<vmem>>) attributes {dimension_semantics = [#tpu.dimension_semantics<parallel>, #tpu.dimension_semantics<parallel>, #tpu.dimension_semantics<arbitrary>, #tpu.dimension_semantics<arbitrary>], iteration_bounds = array<i64: 2, 1, 1, 3>, scalar_prefetch = 0 : i64, scratch_operands = 7 : i64, tpu.core_type = #tpu.core_type<tc>, window_params = [{transform_indices = @transform_0, window_bounds = array<i64: 1, 1, 32, 128>}, {transform_indices = @transform_1, window_bounds = array<i64: 1, 1, 32, 128>}, {transform_indices = @transform_2, window_bounds = array<i64: 1, 2, 32, 128>}, {transform_indices = @transform_3, window_bounds = array<i64: 1, 1, 8, 128>}]} {
    %c0_i32 = arith.constant 0 : i32
    %0 = arith.cmpi eq, %arg2, %c0_i32 : i32
    %1 = arith.extui %0 : i1 to i32
    %c0_i32_0 = arith.constant 0 : i32
    %2 = arith.cmpi ne, %1, %c0_i32_0 : i32
    scf.if %2 {
      %cst_37 = arith.constant 0.000000e+00 : f32
      %77 = vector.broadcast %cst_37 : f32 to vector<8x128xf32>
      %78 = arith.index_cast %arg3 : i32 to index
      %c0_38 = arith.constant 0 : index
      %c0_39 = arith.constant 0 : index
      %79 = vector.load %arg11[%78, %c0_38, %c0_39] : memref<3x8x128xf32, #tpu.memory_space<vmem>>, vector<1x8x128xf32>
      %80 = vector.shape_cast %79 : vector<1x8x128xf32> to vector<8x128xf32>
      %81 = vector.shape_cast %77 : vector<8x128xf32> to vector<1x8x128xf32>
      tpu.vector_store %arg11[%78, %c0_38, %c0_39], %81 {strides = array<i32>} : memref<3x8x128xf32, #tpu.memory_space<vmem>>, vector<1x8x128xf32>,
      %82 = arith.index_cast %arg3 : i32 to index
      %c0_40 = arith.constant 0 : index
      %c0_41 = arith.constant 0 : index
      %83 = vector.load %arg12[%82, %c0_40, %c0_41] : memref<3x8x128xf32, #tpu.memory_space<vmem>>, vector<1x8x128xf32>
      %84 = vector.shape_cast %83 : vector<1x8x128xf32> to vector<8x128xf32>
      %85 = vector.shape_cast %77 : vector<8x128xf32> to vector<1x8x128xf32>
      tpu.vector_store %arg12[%82, %c0_40, %c0_41], %85 {strides = array<i32>} : memref<3x8x128xf32, #tpu.memory_space<vmem>>, vector<1x8x128xf32>,
      %86 = arith.index_cast %arg3 : i32 to index
      %c0_42 = arith.constant 0 : index
      %c0_43 = arith.constant 0 : index
      %87 = vector.load %arg13[%86, %c0_42, %c0_43] : memref<3x8x128xf32, #tpu.memory_space<vmem>>, vector<1x8x128xf32>
      %88 = vector.shape_cast %87 : vector<1x8x128xf32> to vector<8x128xf32>
      %89 = vector.shape_cast %77 : vector<8x128xf32> to vector<1x8x128xf32>
      tpu.vector_store %arg13[%86, %c0_42, %c0_43], %89 {strides = array<i32>} : memref<3x8x128xf32, #tpu.memory_space<vmem>>, vector<1x8x128xf32>,
    } else {
    }
    %c0_i32_1 = arith.constant 0 : i32
    %3 = arith.cmpi eq, %arg2, %c0_i32_1 : i32
    %c0_i32_2 = arith.constant 0 : i32
    %4 = arith.cmpi eq, %arg3, %c0_i32_2 : i32
    %5 = arith.andi %3, %4 : i1
    %6 = arith.extui %5 : i1 to i32
    %c0_i32_3 = arith.constant 0 : i32
    %7 = arith.cmpi ne, %6, %c0_i32_3 : i32
    scf.if %7 {
      %cst_37 = arith.constant 0.000000e+00 : f32
      %77 = vector.broadcast %cst_37 : f32 to vector<2x8x128xf32>
      %c0_38 = arith.constant 0 : index
      %c0_39 = arith.constant 0 : index
      %c0_40 = arith.constant 0 : index
      %78 = vector.load %arg14[%c0_38, %c0_39, %c0_40] : memref<2x8x128xf32, #tpu.memory_space<vmem>>, vector<2x8x128xf32>
      tpu.vector_store %arg14[%c0_38, %c0_39, %c0_40], %77 {strides = array<i32>} : memref<2x8x128xf32, #tpu.memory_space<vmem>>, vector<2x8x128xf32>,
    } else {
    }
    %c0_i32_4 = arith.constant 0 : i32
    %8 = arith.cmpi eq, %arg3, %c0_i32_4 : i32
    %9 = arith.extui %8 : i1 to i32
    %c0_i32_5 = arith.constant 0 : i32
    %10 = arith.cmpi ne, %9, %c0_i32_5 : i32
    scf.if %10 {
      %c0_37 = arith.constant 0 : index
      %c0_38 = arith.constant 0 : index
      %c0_39 = arith.constant 0 : index
      %c0_40 = arith.constant 0 : index
      %77 = vector.load %arg5[%c0_37, %c0_38, %c0_39, %c0_40] : memref<1x1x32x128xi8, #tpu.memory_space<vmem>>, vector<1x1x32x128xi8>
      %78 = vector.shape_cast %77 : vector<1x1x32x128xi8> to vector<32x128xi8>
      %79 = arith.sitofp %78 : vector<32x128xi8> to vector<32x128xf32>
      %80 = arith.mulf %79, %79 : vector<32x128xf32>
      %c0_41 = arith.constant 0 : index
      %c0_42 = arith.constant 0 : index
      %81 = vector.load %arg8[%c0_41, %c0_42] : memref<32x128xf32, #tpu.memory_space<vmem>>, vector<32x128xf32>
      tpu.vector_store %arg8[%c0_41, %c0_42], %79 {strides = array<i32>} : memref<32x128xf32, #tpu.memory_space<vmem>>, vector<32x128xf32>,
      %c0_43 = arith.constant 0 : index
      %c0_44 = arith.constant 0 : index
      %82 = vector.load %arg9[%c0_43, %c0_44] : memref<32x128xf32, #tpu.memory_space<vmem>>, vector<32x128xf32>
      tpu.vector_store %arg9[%c0_43, %c0_44], %80 {strides = array<i32>} : memref<32x128xf32, #tpu.memory_space<vmem>>, vector<32x128xf32>,
      %c0_45 = arith.constant 0 : index
      %c0_46 = arith.constant 0 : index
      %c0_47 = arith.constant 0 : index
      %c0_48 = arith.constant 0 : index
      %83 = vector.load %arg6[%c0_45, %c0_46, %c0_47, %c0_48] : memref<1x2x32x128xf32, #tpu.memory_space<vmem>>, vector<1x2x32x128xf32>
      %84 = vector.shape_cast %83 : vector<1x2x32x128xf32> to vector<2x32x128xf32>
      %cst_49 = arith.constant dense<0xFF800000> : vector<32x128xf32>
      %85 = vector.multi_reduction <maximumf>, %84, %cst_49 [0] : vector<2x32x128xf32> to vector<32x128xf32>
      %cst_50 = arith.constant 9.900000e-01 : f32
      %86 = vector.broadcast %cst_50 : f32 to vector<32x128xf32>
      %87 = arith.mulf %85, %86 : vector<32x128xf32>
      %cst_51 = arith.constant 0.00999999977 : f32
      %88 = vector.broadcast %cst_51 : f32 to vector<32x128xf32>
      %89 = arith.addf %87, %88 : vector<32x128xf32>
      %90 = tpu.iota {dimensions = array<i32: 0>} : vector<32x128xi32>
      %91 = tpu.iota {dimensions = array<i32: 1>} : vector<32x128xi32>
      %c1_i32 = arith.constant 1 : i32
      %92 = arith.muli %arg1, %c1_i32 : i32
      %93 = arith.addi %92, %arg2 : i32
      %c32_i32 = arith.constant 32 : i32
      %94 = arith.muli %93, %c32_i32 : i32
      %95 = vector.broadcast %94 : i32 to vector<32x128xi32>
      %96 = arith.addi %95, %90 : vector<32x128xi32>
      %c128_i32 = arith.constant 128 : i32
      %97 = vector.broadcast %c128_i32 : i32 to vector<32x128xi32>
      %98 = arith.muli %96, %97 : vector<32x128xi32>
      %99 = arith.addi %98, %91 : vector<32x128xi32>
      %c256_i32 = arith.constant 256 : i32
      %100 = vector.broadcast %c256_i32 : i32 to vector<32x128xi32>
      %101 = arith.cmpi slt, %99, %100 : vector<32x128xi32>
      %102 = arith.extui %101 : vector<32x128xi1> to vector<32x128xi32>
      %103 = arith.sitofp %102 : vector<32x128xi32> to vector<32x128xf32>
      %104 = arith.mulf %89, %103 : vector<32x128xf32>
      %c0_52 = arith.constant 0 : index
      %c0_53 = arith.constant 0 : index
      %c0_54 = arith.constant 0 : index
      %105 = vector.load %arg14[%c0_52, %c0_53, %c0_54] : memref<2x8x128xf32, #tpu.memory_space<vmem>>, vector<1x8x128xf32>
      %106 = vector.shape_cast %105 : vector<1x8x128xf32> to vector<8x128xf32>
      %107 = vector.shape_cast %80 : vector<32x128xf32> to vector<4x8x128xf32>
      %cst_55 = arith.constant dense<0.000000e+00> : vector<8x128xf32>
      %108 = vector.multi_reduction <add>, %107, %cst_55 [0] : vector<4x8x128xf32> to vector<8x128xf32>
      %109 = arith.addf %106, %108 : vector<8x128xf32>
      %c0_56 = arith.constant 0 : index
      %c0_57 = arith.constant 0 : index
      %c0_58 = arith.constant 0 : index
      %110 = vector.load %arg14[%c0_56, %c0_57, %c0_58] : memref<2x8x128xf32, #tpu.memory_space<vmem>>, vector<1x8x128xf32>
      %111 = vector.shape_cast %110 : vector<1x8x128xf32> to vector<8x128xf32>
      %112 = vector.shape_cast %109 : vector<8x128xf32> to vector<1x8x128xf32>
      tpu.vector_store %arg14[%c0_56, %c0_57, %c0_58], %112 {strides = array<i32>} : memref<2x8x128xf32, #tpu.memory_space<vmem>>, vector<1x8x128xf32>,
      %c1 = arith.constant 1 : index
      %c0_59 = arith.constant 0 : index
      %c0_60 = arith.constant 0 : index
      %113 = vector.load %arg14[%c1, %c0_59, %c0_60] : memref<2x8x128xf32, #tpu.memory_space<vmem>>, vector<1x8x128xf32>
      %114 = vector.shape_cast %113 : vector<1x8x128xf32> to vector<8x128xf32>
      %115 = vector.shape_cast %104 : vector<32x128xf32> to vector<4x8x128xf32>
      %cst_61 = arith.constant dense<0.000000e+00> : vector<8x128xf32>
      %116 = vector.multi_reduction <add>, %115, %cst_61 [0] : vector<4x8x128xf32> to vector<8x128xf32>
      %117 = arith.addf %114, %116 : vector<8x128xf32>
      %c1_62 = arith.constant 1 : index
      %c0_63 = arith.constant 0 : index
      %c0_64 = arith.constant 0 : index
      %118 = vector.load %arg14[%c1_62, %c0_63, %c0_64] : memref<2x8x128xf32, #tpu.memory_space<vmem>>, vector<1x8x128xf32>
      %119 = vector.shape_cast %118 : vector<1x8x128xf32> to vector<8x128xf32>
      %120 = vector.shape_cast %117 : vector<8x128xf32> to vector<1x8x128xf32>
      tpu.vector_store %arg14[%c1_62, %c0_63, %c0_64], %120 {strides = array<i32>} : memref<2x8x128xf32, #tpu.memory_space<vmem>>, vector<1x8x128xf32>,
      %121 = arith.mulf %104, %80 : vector<32x128xf32>
      %c0_65 = arith.constant 0 : index
      %c0_66 = arith.constant 0 : index
      %122 = vector.load %arg10[%c0_65, %c0_66] : memref<32x128xf32, #tpu.memory_space<vmem>>, vector<32x128xf32>
      tpu.vector_store %arg10[%c0_65, %c0_66], %121 {strides = array<i32>} : memref<32x128xf32, #tpu.memory_space<vmem>>, vector<32x128xf32>,
    } else {
    }
    %c0 = arith.constant 0 : index
    %c0_6 = arith.constant 0 : index
    %c0_7 = arith.constant 0 : index
    %c0_8 = arith.constant 0 : index
    %11 = vector.load %arg4[%c0, %c0_6, %c0_7, %c0_8] : memref<1x1x32x128xf32, #tpu.memory_space<vmem>>, vector<1x1x32x128xf32>
    %12 = vector.shape_cast %11 : vector<1x1x32x128xf32> to vector<32x128xf32>
    %c0_9 = arith.constant 0 : index
    %c0_10 = arith.constant 0 : index
    %13 = vector.load %arg8[%c0_9, %c0_10] : memref<32x128xf32, #tpu.memory_space<vmem>>, vector<32x128xf32>
    %c0_11 = arith.constant 0 : index
    %c0_12 = arith.constant 0 : index
    %14 = vector.load %arg9[%c0_11, %c0_12] : memref<32x128xf32, #tpu.memory_space<vmem>>, vector<32x128xf32>
    %15 = arith.mulf %12, %13 : vector<32x128xf32>
    %16 = math.absf %15 : vector<32x128xf32>
    %cst = arith.constant 0.000000e+00 : f32
    %17 = vector.broadcast %cst : f32 to vector<32x128xf32>
    %18 = arith.subf %17, %16 : vector<32x128xf32>
    %19 = math.exp %18 : vector<32x128xf32>
    %cst_13 = arith.constant 1.000000e+00 : f32
    %20 = vector.broadcast %cst_13 : f32 to vector<32x128xf32>
    %21 = arith.addf %20, %19 : vector<32x128xf32>
    %22 = tpu.reciprocal %21 {approx = true} : vector<32x128xf32> -> vector<32x128xf32>
    %23 = arith.mulf %21, %22 : vector<32x128xf32>
    %cst_14 = arith.constant 2.000000e+00 : f32
    %24 = vector.broadcast %cst_14 : f32 to vector<32x128xf32>
    %25 = arith.subf %24, %23 : vector<32x128xf32>
    %26 = arith.mulf %22, %25 : vector<32x128xf32>
    %cst_15 = arith.constant 0.000000e+00 : f32
    %27 = vector.broadcast %cst_15 : f32 to vector<32x128xf32>
    %28 = arith.cmpf oge, %15, %27 : vector<32x128xf32>
    %29 = arith.mulf %19, %26 : vector<32x128xf32>
    %30 = arith.select %28, %29, %26 : vector<32x128xi1>, vector<32x128xf32>
    %31 = arith.mulf %30, %14 : vector<32x128xf32>
    %32 = math.log1p %19 : vector<32x128xf32>
    %cst_16 = arith.constant 0.000000e+00 : f32
    %33 = vector.broadcast %cst_16 : f32 to vector<32x128xf32>
    %34 = arith.minimumf %15, %33 : vector<32x128xf32>
    %35 = arith.subf %32, %34 : vector<32x128xf32>
    %cst_17 = arith.constant 27.6310215 : f32
    %36 = vector.broadcast %cst_17 : f32 to vector<32x128xf32>
    %37 = arith.minimumf %35, %36 : vector<32x128xf32>
    %38 = arith.mulf %31, %31 : vector<32x128xf32>
    %39 = arith.index_cast %arg3 : i32 to index
    %c0_18 = arith.constant 0 : index
    %c0_19 = arith.constant 0 : index
    %40 = vector.load %arg11[%39, %c0_18, %c0_19] : memref<3x8x128xf32, #tpu.memory_space<vmem>>, vector<1x8x128xf32>
    %41 = vector.shape_cast %40 : vector<1x8x128xf32> to vector<8x128xf32>
    %42 = arith.mulf %38, %37 : vector<32x128xf32>
    %43 = vector.shape_cast %42 : vector<32x128xf32> to vector<4x8x128xf32>
    %cst_20 = arith.constant dense<0.000000e+00> : vector<8x128xf32>
    %44 = vector.multi_reduction <add>, %43, %cst_20 [0] : vector<4x8x128xf32> to vector<8x128xf32>
    %45 = arith.addf %41, %44 : vector<8x128xf32>
    %46 = arith.index_cast %arg3 : i32 to index
    %c0_21 = arith.constant 0 : index
    %c0_22 = arith.constant 0 : index
    %47 = vector.load %arg11[%46, %c0_21, %c0_22] : memref<3x8x128xf32, #tpu.memory_space<vmem>>, vector<1x8x128xf32>
    %48 = vector.shape_cast %47 : vector<1x8x128xf32> to vector<8x128xf32>
    %49 = vector.shape_cast %45 : vector<8x128xf32> to vector<1x8x128xf32>
    tpu.vector_store %arg11[%46, %c0_21, %c0_22], %49 {strides = array<i32>} : memref<3x8x128xf32, #tpu.memory_space<vmem>>, vector<1x8x128xf32>,
    %50 = arith.index_cast %arg3 : i32 to index
    %c0_23 = arith.constant 0 : index
    %c0_24 = arith.constant 0 : index
    %51 = vector.load %arg12[%50, %c0_23, %c0_24] : memref<3x8x128xf32, #tpu.memory_space<vmem>>, vector<1x8x128xf32>
    %52 = vector.shape_cast %51 : vector<1x8x128xf32> to vector<8x128xf32>
    %53 = vector.shape_cast %38 : vector<32x128xf32> to vector<4x8x128xf32>
    %cst_25 = arith.constant dense<0.000000e+00> : vector<8x128xf32>
    %54 = vector.multi_reduction <add>, %53, %cst_25 [0] : vector<4x8x128xf32> to vector<8x128xf32>
    %55 = arith.addf %52, %54 : vector<8x128xf32>
    %56 = arith.index_cast %arg3 : i32 to index
    %c0_26 = arith.constant 0 : index
    %c0_27 = arith.constant 0 : index
    %57 = vector.load %arg12[%56, %c0_26, %c0_27] : memref<3x8x128xf32, #tpu.memory_space<vmem>>, vector<1x8x128xf32>
    %58 = vector.shape_cast %57 : vector<1x8x128xf32> to vector<8x128xf32>
    %59 = vector.shape_cast %55 : vector<8x128xf32> to vector<1x8x128xf32>
    tpu.vector_store %arg12[%56, %c0_26, %c0_27], %59 {strides = array<i32>} : memref<3x8x128xf32, #tpu.memory_space<vmem>>, vector<1x8x128xf32>,
    %60 = arith.index_cast %arg3 : i32 to index
    %c0_28 = arith.constant 0 : index
    %c0_29 = arith.constant 0 : index
    %61 = vector.load %arg13[%60, %c0_28, %c0_29] : memref<3x8x128xf32, #tpu.memory_space<vmem>>, vector<1x8x128xf32>
    %62 = vector.shape_cast %61 : vector<1x8x128xf32> to vector<8x128xf32>
    %c0_30 = arith.constant 0 : index
    %c0_31 = arith.constant 0 : index
    %63 = vector.load %arg10[%c0_30, %c0_31] : memref<32x128xf32, #tpu.memory_space<vmem>>, vector<32x128xf32>
    %64 = arith.mulf %35, %63 : vector<32x128xf32>
    %65 = vector.shape_cast %64 : vector<32x128xf32> to vector<4x8x128xf32>
    %cst_32 = arith.constant dense<0.000000e+00> : vector<8x128xf32>
    %66 = vector.multi_reduction <add>, %65, %cst_32 [0] : vector<4x8x128xf32> to vector<8x128xf32>
    %67 = arith.addf %62, %66 : vector<8x128xf32>
    %68 = arith.index_cast %arg3 : i32 to index
    %c0_33 = arith.constant 0 : index
    %c0_34 = arith.constant 0 : index
    %69 = vector.load %arg13[%68, %c0_33, %c0_34] : memref<3x8x128xf32, #tpu.memory_space<vmem>>, vector<1x8x128xf32>
    %70 = vector.shape_cast %69 : vector<1x8x128xf32> to vector<8x128xf32>
    %71 = vector.shape_cast %67 : vector<8x128xf32> to vector<1x8x128xf32>
    tpu.vector_store %arg13[%68, %c0_33, %c0_34], %71 {strides = array<i32>} : memref<3x8x128xf32, #tpu.memory_space<vmem>>, vector<1x8x128xf32>,
    %c0_i32_35 = arith.constant 0 : i32
    %72 = arith.cmpi eq, %arg2, %c0_i32_35 : i32
    %c2_i32 = arith.constant 2 : i32
    %73 = arith.cmpi eq, %arg3, %c2_i32 : i32
    %74 = arith.andi %72, %73 : i1
    %75 = arith.extui %74 : i1 to i32
    %c0_i32_36 = arith.constant 0 : i32
    %76 = arith.cmpi ne, %75, %c0_i32_36 : i32
    scf.if %76 {
      %77 = tpu.iota {dimensions = array<i32: 0>} : vector<8x128xi32>
      %78 = tpu.iota {dimensions = array<i32: 1>} : vector<8x128xi32>
      %c3_i32 = arith.constant 3 : i32
      %79 = vector.broadcast %c3_i32 : i32 to vector<8x128xi32>
      %80 = arith.cmpi eq, %77, %79 : vector<8x128xi32>
      %c0_37 = arith.constant 0 : index
      %c0_38 = arith.constant 0 : index
      %c0_39 = arith.constant 0 : index
      %81 = vector.load %arg14[%c0_37, %c0_38, %c0_39] : memref<2x8x128xf32, #tpu.memory_space<vmem>>, vector<1x8x128xf32>
      %82 = vector.shape_cast %81 : vector<1x8x128xf32> to vector<8x128xf32>
      %83 = vector.shape_cast %82 : vector<8x128xf32> to vector<1x8x128xf32>
      %cst_40 = arith.constant dense<0.000000e+00> : vector<1xf32>
      %84 = vector.multi_reduction <add>, %83, %cst_40 [1, 2] : vector<1x8x128xf32> to vector<1xf32>
      %85 = vector.shape_cast %84 : vector<1xf32> to vector<1x1x1xf32>
      %86 = vector.extract %85[0, 0, 0] : f32 from vector<1x1x1xf32>
      %c4_i32 = arith.constant 4 : i32
      %87 = vector.broadcast %c4_i32 : i32 to vector<8x128xi32>
      %88 = arith.cmpi eq, %77, %87 : vector<8x128xi32>
      %c1 = arith.constant 1 : index
      %c0_41 = arith.constant 0 : index
      %c0_42 = arith.constant 0 : index
      %89 = vector.load %arg14[%c1, %c0_41, %c0_42] : memref<2x8x128xf32, #tpu.memory_space<vmem>>, vector<1x8x128xf32>
      %90 = vector.shape_cast %89 : vector<1x8x128xf32> to vector<8x128xf32>
      %91 = vector.shape_cast %90 : vector<8x128xf32> to vector<1x8x128xf32>
      %cst_43 = arith.constant dense<0.000000e+00> : vector<1xf32>
      %92 = vector.multi_reduction <add>, %91, %cst_43 [1, 2] : vector<1x8x128xf32> to vector<1xf32>
      %93 = vector.shape_cast %92 : vector<1xf32> to vector<1x1x1xf32>
      %94 = vector.extract %93[0, 0, 0] : f32 from vector<1x1x1xf32>
      %cst_44 = arith.constant 0.000000e+00 : f32
      %95 = vector.broadcast %94 : f32 to vector<8x128xf32>
      %96 = vector.broadcast %cst_44 : f32 to vector<8x128xf32>
      %97 = arith.select %88, %95, %96 : vector<8x128xi1>, vector<8x128xf32>
      %98 = vector.broadcast %86 : f32 to vector<8x128xf32>
      %99 = arith.select %80, %98, %97 : vector<8x128xi1>, vector<8x128xf32>
      %c0_i32_45 = arith.constant 0 : i32
      %100 = vector.broadcast %c0_i32_45 : i32 to vector<8x128xi32>
      %101 = arith.cmpi eq, %78, %100 : vector<8x128xi32>
      %c0_i32_46 = arith.constant 0 : i32
      %102 = vector.broadcast %c0_i32_46 : i32 to vector<8x128xi32>
      %103 = arith.cmpi eq, %77, %102 : vector<8x128xi32>
      %104 = arith.andi %101, %103 : vector<8x128xi1>
      %c0_47 = arith.constant 0 : index
      %c0_48 = arith.constant 0 : index
      %c0_49 = arith.constant 0 : index
      %105 = vector.load %arg11[%c0_47, %c0_48, %c0_49] : memref<3x8x128xf32, #tpu.memory_space<vmem>>, vector<1x8x128xf32>
      %106 = vector.shape_cast %105 : vector<1x8x128xf32> to vector<8x128xf32>
      %107 = vector.shape_cast %106 : vector<8x128xf32> to vector<1x8x128xf32>
      %cst_50 = arith.constant dense<0.000000e+00> : vector<1xf32>
      %108 = vector.multi_reduction <add>, %107, %cst_50 [1, 2] : vector<1x8x128xf32> to vector<1xf32>
      %109 = vector.shape_cast %108 : vector<1xf32> to vector<1x1x1xf32>
      %110 = vector.extract %109[0, 0, 0] : f32 from vector<1x1x1xf32>
      %111 = vector.broadcast %110 : f32 to vector<8x128xf32>
      %112 = arith.select %104, %111, %99 : vector<8x128xi1>, vector<8x128xf32>
      %c1_i32 = arith.constant 1 : i32
      %113 = vector.broadcast %c1_i32 : i32 to vector<8x128xi32>
      %114 = arith.cmpi eq, %77, %113 : vector<8x128xi32>
      %115 = arith.andi %101, %114 : vector<8x128xi1>
      %c0_51 = arith.constant 0 : index
      %c0_52 = arith.constant 0 : index
      %c0_53 = arith.constant 0 : index
      %116 = vector.load %arg12[%c0_51, %c0_52, %c0_53] : memref<3x8x128xf32, #tpu.memory_space<vmem>>, vector<1x8x128xf32>
      %117 = vector.shape_cast %116 : vector<1x8x128xf32> to vector<8x128xf32>
      %118 = vector.shape_cast %117 : vector<8x128xf32> to vector<1x8x128xf32>
      %cst_54 = arith.constant dense<0.000000e+00> : vector<1xf32>
      %119 = vector.multi_reduction <add>, %118, %cst_54 [1, 2] : vector<1x8x128xf32> to vector<1xf32>
      %120 = vector.shape_cast %119 : vector<1xf32> to vector<1x1x1xf32>
      %121 = vector.extract %120[0, 0, 0] : f32 from vector<1x1x1xf32>
      %122 = vector.broadcast %121 : f32 to vector<8x128xf32>
      %123 = arith.select %115, %122, %112 : vector<8x128xi1>, vector<8x128xf32>
      %c2_i32_55 = arith.constant 2 : i32
      %124 = vector.broadcast %c2_i32_55 : i32 to vector<8x128xi32>
      %125 = arith.cmpi eq, %77, %124 : vector<8x128xi32>
      %126 = arith.andi %101, %125 : vector<8x128xi1>
      %c0_56 = arith.constant 0 : index
      %c0_57 = arith.constant 0 : index
      %c0_58 = arith.constant 0 : index
      %127 = vector.load %arg13[%c0_56, %c0_57, %c0_58] : memref<3x8x128xf32, #tpu.memory_space<vmem>>, vector<1x8x128xf32>
      %128 = vector.shape_cast %127 : vector<1x8x128xf32> to vector<8x128xf32>
      %129 = vector.shape_cast %128 : vector<8x128xf32> to vector<1x8x128xf32>
      %cst_59 = arith.constant dense<0.000000e+00> : vector<1xf32>
      %130 = vector.multi_reduction <add>, %129, %cst_59 [1, 2] : vector<1x8x128xf32> to vector<1xf32>
      %131 = vector.shape_cast %130 : vector<1xf32> to vector<1x1x1xf32>
      %132 = vector.extract %131[0, 0, 0] : f32 from vector<1x1x1xf32>
      %133 = vector.broadcast %132 : f32 to vector<8x128xf32>
      %134 = arith.select %126, %133, %123 : vector<8x128xi1>, vector<8x128xf32>
      %c1_i32_60 = arith.constant 1 : i32
      %135 = vector.broadcast %c1_i32_60 : i32 to vector<8x128xi32>
      %136 = arith.cmpi eq, %78, %135 : vector<8x128xi32>
      %c0_i32_61 = arith.constant 0 : i32
      %137 = vector.broadcast %c0_i32_61 : i32 to vector<8x128xi32>
      %138 = arith.cmpi eq, %77, %137 : vector<8x128xi32>
      %139 = arith.andi %136, %138 : vector<8x128xi1>
      %c1_62 = arith.constant 1 : index
      %c0_63 = arith.constant 0 : index
      %c0_64 = arith.constant 0 : index
      %140 = vector.load %arg11[%c1_62, %c0_63, %c0_64] : memref<3x8x128xf32, #tpu.memory_space<vmem>>, vector<1x8x128xf32>
      %141 = vector.shape_cast %140 : vector<1x8x128xf32> to vector<8x128xf32>
      %142 = vector.shape_cast %141 : vector<8x128xf32> to vector<1x8x128xf32>
      %cst_65 = arith.constant dense<0.000000e+00> : vector<1xf32>
      %143 = vector.multi_reduction <add>, %142, %cst_65 [1, 2] : vector<1x8x128xf32> to vector<1xf32>
      %144 = vector.shape_cast %143 : vector<1xf32> to vector<1x1x1xf32>
      %145 = vector.extract %144[0, 0, 0] : f32 from vector<1x1x1xf32>
      %146 = vector.broadcast %145 : f32 to vector<8x128xf32>
      %147 = arith.select %139, %146, %134 : vector<8x128xi1>, vector<8x128xf32>
      %c1_i32_66 = arith.constant 1 : i32
      %148 = vector.broadcast %c1_i32_66 : i32 to vector<8x128xi32>
      %149 = arith.cmpi eq, %77, %148 : vector<8x128xi32>
      %150 = arith.andi %136, %149 : vector<8x128xi1>
      %c1_67 = arith.constant 1 : index
      %c0_68 = arith.constant 0 : index
      %c0_69 = arith.constant 0 : index
      %151 = vector.load %arg12[%c1_67, %c0_68, %c0_69] : memref<3x8x128xf32, #tpu.memory_space<vmem>>, vector<1x8x128xf32>
      %152 = vector.shape_cast %151 : vector<1x8x128xf32> to vector<8x128xf32>
      %153 = vector.shape_cast %152 : vector<8x128xf32> to vector<1x8x128xf32>
      %cst_70 = arith.constant dense<0.000000e+00> : vector<1xf32>
      %154 = vector.multi_reduction <add>, %153, %cst_70 [1, 2] : vector<1x8x128xf32> to vector<1xf32>
      %155 = vector.shape_cast %154 : vector<1xf32> to vector<1x1x1xf32>
      %156 = vector.extract %155[0, 0, 0] : f32 from vector<1x1x1xf32>
      %157 = vector.broadcast %156 : f32 to vector<8x128xf32>
      %158 = arith.select %150, %157, %147 : vector<8x128xi1>, vector<8x128xf32>
      %c2_i32_71 = arith.constant 2 : i32
      %159 = vector.broadcast %c2_i32_71 : i32 to vector<8x128xi32>
      %160 = arith.cmpi eq, %77, %159 : vector<8x128xi32>
      %161 = arith.andi %136, %160 : vector<8x128xi1>
      %c1_72 = arith.constant 1 : index
      %c0_73 = arith.constant 0 : index
      %c0_74 = arith.constant 0 : index
      %162 = vector.load %arg13[%c1_72, %c0_73, %c0_74] : memref<3x8x128xf32, #tpu.memory_space<vmem>>, vector<1x8x128xf32>
      %163 = vector.shape_cast %162 : vector<1x8x128xf32> to vector<8x128xf32>
      %164 = vector.shape_cast %163 : vector<8x128xf32> to vector<1x8x128xf32>
      %cst_75 = arith.constant dense<0.000000e+00> : vector<1xf32>
      %165 = vector.multi_reduction <add>, %164, %cst_75 [1, 2] : vector<1x8x128xf32> to vector<1xf32>
      %166 = vector.shape_cast %165 : vector<1xf32> to vector<1x1x1xf32>
      %167 = vector.extract %166[0, 0, 0] : f32 from vector<1x1x1xf32>
      %168 = vector.broadcast %167 : f32 to vector<8x128xf32>
      %169 = arith.select %161, %168, %158 : vector<8x128xi1>, vector<8x128xf32>
      %c2_i32_76 = arith.constant 2 : i32
      %170 = vector.broadcast %c2_i32_76 : i32 to vector<8x128xi32>
      %171 = arith.cmpi eq, %78, %170 : vector<8x128xi32>
      %c0_i32_77 = arith.constant 0 : i32
      %172 = vector.broadcast %c0_i32_77 : i32 to vector<8x128xi32>
      %173 = arith.cmpi eq, %77, %172 : vector<8x128xi32>
      %174 = arith.andi %171, %173 : vector<8x128xi1>
      %c2 = arith.constant 2 : index
      %c0_78 = arith.constant 0 : index
      %c0_79 = arith.constant 0 : index
      %175 = vector.load %arg11[%c2, %c0_78, %c0_79] : memref<3x8x128xf32, #tpu.memory_space<vmem>>, vector<1x8x128xf32>
      %176 = vector.shape_cast %175 : vector<1x8x128xf32> to vector<8x128xf32>
      %177 = vector.shape_cast %176 : vector<8x128xf32> to vector<1x8x128xf32>
      %cst_80 = arith.constant dense<0.000000e+00> : vector<1xf32>
      %178 = vector.multi_reduction <add>, %177, %cst_80 [1, 2] : vector<1x8x128xf32> to vector<1xf32>
      %179 = vector.shape_cast %178 : vector<1xf32> to vector<1x1x1xf32>
      %180 = vector.extract %179[0, 0, 0] : f32 from vector<1x1x1xf32>
      %181 = vector.broadcast %180 : f32 to vector<8x128xf32>
      %182 = arith.select %174, %181, %169 : vector<8x128xi1>, vector<8x128xf32>
      %c1_i32_81 = arith.constant 1 : i32
      %183 = vector.broadcast %c1_i32_81 : i32 to vector<8x128xi32>
      %184 = arith.cmpi eq, %77, %183 : vector<8x128xi32>
      %185 = arith.andi %171, %184 : vector<8x128xi1>
      %c2_82 = arith.constant 2 : index
      %c0_83 = arith.constant 0 : index
      %c0_84 = arith.constant 0 : index
      %186 = vector.load %arg12[%c2_82, %c0_83, %c0_84] : memref<3x8x128xf32, #tpu.memory_space<vmem>>, vector<1x8x128xf32>
      %187 = vector.shape_cast %186 : vector<1x8x128xf32> to vector<8x128xf32>
      %188 = vector.shape_cast %187 : vector<8x128xf32> to vector<1x8x128xf32>
      %cst_85 = arith.constant dense<0.000000e+00> : vector<1xf32>
      %189 = vector.multi_reduction <add>, %188, %cst_85 [1, 2] : vector<1x8x128xf32> to vector<1xf32>
      %190 = vector.shape_cast %189 : vector<1xf32> to vector<1x1x1xf32>
      %191 = vector.extract %190[0, 0, 0] : f32 from vector<1x1x1xf32>
      %192 = vector.broadcast %191 : f32 to vector<8x128xf32>
      %193 = arith.select %185, %192, %182 : vector<8x128xi1>, vector<8x128xf32>
      %c2_i32_86 = arith.constant 2 : i32
      %194 = vector.broadcast %c2_i32_86 : i32 to vector<8x128xi32>
      %195 = arith.cmpi eq, %77, %194 : vector<8x128xi32>
      %196 = arith.andi %171, %195 : vector<8x128xi1>
      %c2_87 = arith.constant 2 : index
      %c0_88 = arith.constant 0 : index
      %c0_89 = arith.constant 0 : index
      %197 = vector.load %arg13[%c2_87, %c0_88, %c0_89] : memref<3x8x128xf32, #tpu.memory_space<vmem>>, vector<1x8x128xf32>
      %198 = vector.shape_cast %197 : vector<1x8x128xf32> to vector<8x128xf32>
      %199 = vector.shape_cast %198 : vector<8x128xf32> to vector<1x8x128xf32>
      %cst_90 = arith.constant dense<0.000000e+00> : vector<1xf32>
      %200 = vector.multi_reduction <add>, %199, %cst_90 [1, 2] : vector<1x8x128xf32> to vector<1xf32>
      %201 = vector.shape_cast %200 : vector<1xf32> to vector<1x1x1xf32>
      %202 = vector.extract %201[0, 0, 0] : f32 from vector<1x1x1xf32>
      %203 = vector.broadcast %202 : f32 to vector<8x128xf32>
      %204 = arith.select %196, %203, %193 : vector<8x128xi1>, vector<8x128xf32>
      %c0_91 = arith.constant 0 : index
      %c0_92 = arith.constant 0 : index
      %c0_93 = arith.constant 0 : index
      %c0_94 = arith.constant 0 : index
      %205 = vector.load %arg7[%c0_91, %c0_92, %c0_93, %c0_94] : memref<1x1x8x128xf32, #tpu.memory_space<vmem>>, vector<1x1x8x128xf32>
      %206 = vector.shape_cast %205 : vector<1x1x8x128xf32> to vector<8x128xf32>
      %207 = vector.shape_cast %204 : vector<8x128xf32> to vector<1x1x8x128xf32>
      tpu.vector_store %arg7[%c0_91, %c0_92, %c0_93, %c0_94], %207 {strides = array<i32>} : memref<1x1x8x128xf32, #tpu.memory_space<vmem>>, vector<1x1x8x128xf32>,
    } else {
    }
    return
  }
  func.func @transform_0(%arg0: i32, %arg1: i32, %arg2: i32, %arg3: i32) -> (i32, i32, i32, i32) {
    %c1_i32 = arith.constant 1 : i32
    %0 = arith.muli %arg1, %c1_i32 : i32
    %1 = arith.addi %0, %arg2 : i32
    %c0_i32 = arith.constant 0 : i32
    %c0_i32_0 = arith.constant 0 : i32
    return %arg0, %arg3, %1, %c0_i32 : i32, i32, i32, i32
  }
  func.func @transform_1(%arg0: i32, %arg1: i32, %arg2: i32, %arg3: i32) -> (i32, i32, i32, i32) {
    %c1_i32 = arith.constant 1 : i32
    %0 = arith.muli %arg1, %c1_i32 : i32
    %1 = arith.addi %0, %arg2 : i32
    %c0_i32 = arith.constant 0 : i32
    %c0_i32_0 = arith.constant 0 : i32
    %c0_i32_1 = arith.constant 0 : i32
    return %arg0, %c0_i32, %1, %c0_i32_0 : i32, i32, i32, i32
  }
  func.func @transform_2(%arg0: i32, %arg1: i32, %arg2: i32, %arg3: i32) -> (i32, i32, i32, i32) {
    %c1_i32 = arith.constant 1 : i32
    %0 = arith.muli %arg1, %c1_i32 : i32
    %1 = arith.addi %0, %arg2 : i32
    %c0_i32 = arith.constant 0 : i32
    %c0_i32_0 = arith.constant 0 : i32
    %c0_i32_1 = arith.constant 0 : i32
    return %arg0, %c0_i32, %1, %c0_i32_0 : i32, i32, i32, i32
  }
  func.func @transform_3(%arg0: i32, %arg1: i32, %arg2: i32, %arg3: i32) -> (i32, i32, i32, i32) {
    %c0_i32 = arith.constant 0 : i32
    %c0_i32_0 = arith.constant 0 : i32
    %c0_i32_1 = arith.constant 0 : i32
    return %arg0, %arg1, %c0_i32, %c0_i32_0 : i32, i32, i32, i32
  }
}

</mosaic_0001>

<bundles_post_ra>
// kernel: tpu_custom_call.1
= control target key start
LH: loop header
LB: loop body
LE: loop exit
PB: predicated region body
PF: predicated region fallthrough
CT: control target
= control target key end

     0   :  { %s1733_s0 = inlined_call_operand.hbm [shape: f32[2,3,32,128], index: 0, kind: input, shape index: {}]   ;;  %s1734_s1 = inlined_call_operand.hbm [shape: s8[2,1,32,128], index: 1, kind: input, shape index: {}]   ;;  %s1735_s2 = inlined_call_operand.hbm [shape: f32[2,2,32,128], index: 2, kind: input, shape index: {}]   ;;  %s1736_s3 = inlined_call_operand.hbm [shape: f32[2,1,8,128], index: 3, kind: output, shape index: {}]  }
   0x1   :  { %1753 = sst [smem:[#allocation31_spill]] %s1734_s1 }
   0x2   :  { %1754 = sst [smem:[#allocation32_spill]] %s1736_s3 }
   0x3   :  { %8 = vsyncpa [#allocation10], 0 }
   0x4   :  { %10 = vsyncpa [#allocation10 + $0x1], 0 }
   0x5   :  { %11 = vsyncpa [#allocation13], 0 }
   0x6   :  { %13 = vsyncpa [#allocation13 + $0x1], 0 }
   0x7   :  { %14 = vsyncpa [#allocation11], 0 }
   0x8   :  { %16 = vsyncpa [#allocation11 + $0x1], 0  ;;  %s1379_s12 = smov 0   ;;  %s1381_s13 = smov 0  }
   0x9   :  { %s1383_s14 = smov 0   ;;  %s1385_s15 = smov 0  }
   0xa   :  { %s1387_s16 = smov 0   ;;  %s1389_s17 = smov 0  }
   0xb   :  { %s1391_s18 = smov 0   ;;  %s1393_s19 = smov 0  }
   0xc   :  { %s1395_s20 = smov 0   ;;  %s1397_s21 = smov 0  }
   0xd   :  { %s1399_s22 = smov 0  }
   0xe LB: > { %1755 = sst [smem:[#allocation19_spill]] %s1312_s12  ;;  %s1433_s23 = sadd.s32 4294967295, %s1352_s22   ;;  %s1352_s22 = sphi %s1399_s22, %s22_s22   ;;  %s1348_s21 = sphi %s1397_s21, %s1808_s21   ;;  %s1344_s20 = sphi %s1395_s20, %s1800_s20   ;;  %s1340_s19 = sphi %s1393_s19, %s1807_s19   ;;  %s1336_s18 = sphi %s1391_s18, %s1799_s18   ;;  %s1332_s17 = sphi %s1389_s17, %s1806_s17   ;;  %s1328_s16 = sphi %s1387_s16, %s1805_s16   ;;  %s1324_s15 = sphi %s1385_s15, %s1804_s15   ;;  %s1320_s14 = sphi %s1383_s14, %s1803_s14   ;;  %s1316_s13 = sphi %s1381_s13, %s1802_s13   ;;  %s1312_s12 = sphi %s1379_s12, %s1798_s12  }
   0xf   : > { %1756 = sst [smem:[#allocation20_spill]] %s1316_s13  ;;  %s940_s24 = sadd.s32 4294967294, %s1352_s22  }
  0x10   : > { %1757 = sst [smem:[#allocation21_spill]] %s1336_s18  ;;  %p68_p0 = scmp.ne.s32.totalorder %s1332_s17, %s1328_s16 }
  0x11   : > { %1758 = sst [smem:[#allocation22_spill]] %s1340_s19  ;;  %p69_p1 = scmp.eq.s32.totalorder %s1352_s22, 0 }
  0x12   : > { %1759 = sst [smem:[#allocation23_spill]] %s1344_s20  ;;  %p74_p2 = scmp.ne.s32.totalorder %s1328_s16, %s1324_s15 }
  0x13   : > { %1760 = sst [smem:[#allocation24_spill]] %s1352_s22  ;;  %p75_p3 = scmp.eq.s32.totalorder %s1433_s23, 0 }
  0x14   : > { %1761 = sst [smem:[#allocation25_spill]] %s1433_s23  ;;  %p1442_p4 = por %p69_p1, %p68_p0 }
  0x15   : > { %p98_p5 = scmp.ne.s32.totalorder %s1320_s14, %s1316_s13  ;;  %p1448_p6 = por %p75_p3, %p74_p2 }
  0x16   : > { %p104_p7 = scmp.ne.s32.totalorder %s1316_s13, %s1312_s12  ;;  %p160_p9 = scmp.eq.s32.totalorder %s1433_s23, 5 }
  0x17   : > { %p1454_p8 = por %p98_p5, %p69_p1  ;;  %p166_p11 = scmp.eq.s32.totalorder %s940_s24, 5 }
  0x18   : > { %p1459_p10 = por %p104_p7, %p75_p3  ;;  %p1463_p12 = por %p160_p9, %p98_p5 }
  0x19   : > { %p1467_p13 = por %p166_p11, %p104_p7  ;;  %p1017_p0 = scmp.lt.s32.totalorder %s1352_s22, 6 }
  0x1a   : > { %s1765_s29 = scalar_select %p1459_p10, 1, 0 }
  0x1b   : > { %s1767_s30 = scalar_select %p1463_p12, 1, 0 }
  0x1c   : > { %1766 = sst [smem:[#allocation26_spill]] %s1765_s29  ;;  %s213_s5 = sand.u32 1, %s1352_s22  }
  0x1d   : > { %1768 = sst [smem:[#allocation27_spill]] %s1767_s30  ;;  %s215_s6 = sand.u32 1, %s1320_s14  }
  0x1e   : > { %s1769_s4 = scalar_select %p1467_p13, 1, 0 }
  0x1f   : > { %p1476_p1 = pnand %p1017_p0, %p1442_p4  ;;  %s946_s8 = sshll.u32 %s215_s6, 3 }
  0x20   : > { %1770 = sst [smem:[#allocation28_spill]] %s1769_s4  ;;  %s947_s9 = sshll.u32 %s1348_s21, 3 }
  0x21   : > { %s1772_s1 = sld [smem:[#allocation31_spill]]  ;;  %s217_s24 = scalar_lea.vmem [#allocation12], %s946_s8 }
  0x22   : > { %s227_s25 = sshll.u32 %s217_s24, 4  ;;  %p1486_p2 = pnand %p1017_p0, %p1454_p8  ;;  %s228_s25 = int_to_ptr.vmem [resolvable:$true] %s227_s25 }
  0x23   : > { %s948_s12 = sshll.u32 %s215_s6, 6  ;;  %p951_p3 = scmp.ge.s32.totalorder %s1352_s22, 1 }
  0x24   : > { %s91_s8 = sadd.s32 1, %s1320_s14  ;;  %p257_p4 = scmp.lt.s32.totalorder %s1352_s22, 7 }
  0x25   : > { %s238_s28 = scalar_lea.vmem [#allocation14], %s948_s12  ;;  %s61_s6 = sadd.s32 1, %s1332_s17 }
  0x26   : > { %s1498_s10 = sshll.u32 %s238_s28, 4  ;;  %p1500_p5 = pnand %p951_p3, %p257_p4  ;;  %s250_s10 = int_to_ptr.vmem [resolvable:$true] %s1498_s10 }
  0x27   : > { %s223_s15 = scalar_lea.hbm %s1772_s1, %s947_s9  ;;  %s1491_s9 = scalar_lea.sflag [#allocation13], %s213_s5 }
  0x28   : > { %s225_s4 = sshll.u32 %s223_s15, 4  ;;  %s37_s15 = sadd.s32 1, %s1344_s20  ;;  %s226_s4 = int_to_ptr.hbm [resolvable:$true] %s225_s4 }
  0x29   : > { %1009 = dma.hbm_to_vmem [thread:$0]  (!%p1486_p2), %s226_s4, 128, %s228_s25, %s1491_s9  }
  0x2a   : > { %p38_p7 = scmp.ge.s32.totalorder %s37_s15, 3  ;;  %s186_s5 = sand.u32 1, %s1332_s17  }
  0x2b   : > { %s943_s24 = sshll.u32 %s186_s5, 5  ;;  %s1776_s1 = sadd.s32 1, %s1348_s21 }
  0x2c   : > { %s1810_s15 = smov (%p38_p7, %s37_s15), 0  ;;  %s1812_s1 = smov (!%p38_p7, %s1776_s1), %s1348_s21 }
  0x2d   : > { %1775 = sst [smem:[#allocation29_spill]] %s1810_s15  ;;  %s55_s25 = ssub.s32 %s1344_s20, %s1810_s15 }
  0x2e   : > { %p50_p8 = scmp.ge.s32.totalorder %s1812_s1, 2  ;;  %s944_s12 = sshll.u32 %s1344_s20, 2 }
  0x2f   : > { %s972_s4 = smul.u32 12, %s1348_s21  ;;  %s190_s28 = scalar_lea.vmem [#allocation9], %s943_s24 }
  0x30   : > { %s203_s22 = sshll.u32 %s190_s28, 4  ;;  %s1814_s1 = smov (%p50_p8, %s1812_s1), 0  ;;  %s204_s22 = int_to_ptr.vmem [resolvable:$true] %s203_s22 }
  0x31   : > { %1777 = sst [smem:[#allocation30_spill]] %s1814_s1  ;;  %s198_s3 = sadd.s32 %s972_s4, %s944_s12 }
  0x32   : > { %s54_s30 = ssub.s32 %s1348_s21, %s1814_s1  ;;  %s945_s19 = sshll.u32 %s198_s3, 3 }
  0x33   : > { %s56_s18 = sor.u32 %s55_s25, %s54_s30  ;;  %p89_p9 = scmp.eq.s32.totalorder %s54_s30, 0 }
  0x34   : > { %p59_p11 = scmp.eq.s32.totalorder %s56_s18, 0  ;;  %s200_s24 = scalar_lea.hbm %s1733_s0, %s945_s19 }
  0x35   : > { %s1524_s28 = scalar_select %p89_p9, %s1320_s14, %s91_s8  }
  0x36   : > { %s1527_s29 = scalar_select %p59_p11, %s1332_s17, %s61_s6  }
  0x37   : > { %s201_s13 = sshll.u32 %s200_s24, 4  ;;  %s187_s12 = scalar_lea.sflag [#allocation10], %s186_s5  ;;  %s202_s13 = int_to_ptr.hbm [resolvable:$true] %s201_s13 }
  0x38   : > { %s1354_s4 = smov 128   ;;  %s1355_s23 = smov 8  }
  0x39   : > { %1006 = dma.hbm_to_vmem [thread:$0]  (!%p1476_p1), %s202_s13, 512, %s204_s22, %s187_s12, %s1354_s4, %s1354_s4, %s1355_s23  }
  0x3a   : > { %s969_s3 = sshll.u32 %s1348_s21, 6  ;;  %261 = sbr.rel (%p1500_p5) target bundleno = 413 (0x19d), region = 32 }
  0x3b   : > { %s246_s18 = scalar_lea.hbm %s1735_s2, %s969_s3  ;;  %s263_s19 = sand.u32 (!%p1500_p5), 1, %s1328_s16  }
  0x3c   : > { %s247_s1 = sshll.u32 %s246_s18, 4  ;;  %s952_s20 = sshll.u32 (!%p1500_p5), %s263_s19, 5  ;;  %s248_s1 = int_to_ptr.hbm [resolvable:$true] %s247_s1 }
  0x3d   : > { %1012 = dma.hbm_to_vmem [thread:$0]  (!%p1486_p2), %s248_s1, 1024, %s250_s10, %s1491_s9, %s1354_s4, %s1354_s4, %s1355_s23  }
  0x3e   : > { %s264_s8 = scalar_lea.sflag (!%p1500_p5), [#allocation10], %s263_s19  ;;  %s1542_s7 = scalar_lea.vmem (!%p1500_p5), [#allocation9], %s952_s20 }
  0x3f   : > { %1299 = dma.done.wait (%p1448_p6), %s264_s8, 512  }
  0x40   : > { %1301 = vsyncadd (%p1448_p6), %s264_s8, 4294966784  ;;  %s1778_s13 = sld [smem:[#allocation25_spill]] }
  0x41   : > { %s1779_s22 = sld [smem:[#allocation20_spill]] }
  0x46   : > { %s273_s26 = sand.u32 1, %s1778_s13  }
  0x47   : > { %s1550_s1 = sand.u32 1, %s1779_s22   ;;  %s274_s9 = scalar_lea.sflag [#allocation13], %s273_s26 }
  0x48   : > { %s953_s23 = sshll.u32 %s1550_s1, 3 }
  0x49   : > { %s277_s10 = scalar_lea.vmem [#allocation12], %s953_s23 }
  0x4a   : > { %1303 = dma.done.wait (%p1459_p10), %s274_s9, 1152  }
  0x4b   : > { %1305 = vsyncadd (%p1459_p10), %s274_s9, 4294966144  ;;  %s1781_s11 = sld [smem:[#allocation21_spill]]  ;;  %s954_s27 = sshll.u32 %s1550_s1, 6  ;;  %v1356_v0 = vmov 0.0  }
  0x4c   : > { %s287_s4 = scalar_lea.vmem [#allocation14], %s954_s27  ;;  %s1569_s3 = scalar_lea.vmem [#allocation15], %s953_s23 }
  0x51   : > { %s956_s6 = sshll.u32 %s1781_s11, 3  ;;  %p337_p6 = scmp.eq.s32.totalorder %s1781_s11, 0 }
  0x52   : > { %s1559_s5 = scalar_lea.vmem [#allocation5], %s956_s6  ;;  %s1563_s24 = scalar_lea.vmem [#allocation6], %s956_s6  ;;  %v1357_v1 = vmov (%p337_p6), 0.0  }
  0x53   : > { %332 = vst [vmem:[%s1559_s5] sm:$0xff] %v1356_v0  ;;  %s1566_s12 = scalar_lea.vmem [#allocation7], %s956_s6  ;;  %341 = sbr.rel (!%p337_p6) target bundleno = 88 (0x58), region = 52 }
  0x54   : > { %334 = vst [vmem:[%s1563_s24] sm:$0xff] %v1356_v0 }
  0x55   : > { %336 = vst [vmem:[%s1566_s12] sm:$0xff] %v1356_v0 }
  0x56   : > { %342 = vst [vmem:[#allocation8] sm:$0xff] (%p337_p6), %v1357_v1 }
  0x57   : > { %343 = vst [vmem:[#allocation8 + $0x8] sm:$0xff] (%p337_p6), %v1357_v1 }
  0x58 PF: > { %s1782_s30 = sld [smem:[#allocation21_spill]] }
  0x5e   : > { %p958_p10 = scmp.ne.s32.totalorder %s1782_s30, 0 }
  0x60   : > { %346 = sbr.rel (%p958_p10) target bundleno = 127 (0x7f), region = 56 }
  0x65   : > { %v347_v2 = vld [vmem:[%s277_s10] sm:$0xff]  ;;  %v368_v3 = vld [vmem:[%s287_s4] sm:$0xff]  ;;  %v388_v4 = vlaneseq  ;;  %v369_v9 = vld [vmem:[%s287_s4 + $0x8] sm:$0xff]  ;;  %v1358_v54 = vmov 0.0  }
  0x66   : > { %v348_v5 = vunpack.c.0.s8 %v347_v2  ;;  %v349_v6 = vunpack.c.1.s8 %v347_v2  ;;  %v350_v7 = vunpack.c.2.s8 %v347_v2  ;;  %v351_v8 = vunpack.c.3.s8 %v347_v2  ;;  %v370_v10 = vld [vmem:[%s287_s4 + $0x10] sm:$0xff]  ;;  %v371_v11 = vld [vmem:[%s287_s4 + $0x18] sm:$0xff]  ;;  %v372_v12 = vld [vmem:[%s287_s4 + $0x20] sm:$0xff] }
  0x67   : > { %v373_v13 = vld [vmem:[%s287_s4 + $0x28] sm:$0xff]  ;;  %v374_v14 = vld [vmem:[%s287_s4 + $0x30] sm:$0xff]  ;;  %v389_v15 = vshrl.u32 %v388_v4, 7  ;;  %v375_v20 = vld [vmem:[%s287_s4 + $0x38] sm:$0xff]  ;;  %v376_v21 = vmax.f32 %v368_v3, %v372_v12  ;;  %v394_v31 = vand.u32 127, %v388_v4 }
  0x68   : > { %v352_v16 = vcvt.s32.f32 %v348_v5  ;;  %v353_v17 = vcvt.s32.f32 %v349_v6  ;;  %v354_v18 = vcvt.s32.f32 %v350_v7  ;;  %v355_v19 = vcvt.s32.f32 %v351_v8  ;;  %v426_v38 = vld [vmem:[#allocation8] sm:$0xff]  ;;  %v433_v5 = vld [vmem:[#allocation8 + $0x8] sm:$0xff] }
  0x69   : > { %v377_v22 = vmax.f32 %v369_v9, %v373_v13  ;;  %v378_v23 = vmax.f32 %v370_v10, %v374_v14  ;;  %v379_v24 = vmax.f32 %v371_v11, %v375_v20  ;;  %v380_v29 = vmul.f32 0.99, %v376_v21 }
  0x6a   : > { %v356_v25 = vmul.f32 %v352_v16, %v352_v16  ;;  %360 = vst [vmem:[#allocation2 + $0x10] sm:$0xff] %v352_v16  ;;  %v357_v26 = vmul.f32 %v353_v17, %v353_v17  ;;  %v358_v27 = vmul.f32 %v354_v18, %v354_v18  ;;  %v359_v28 = vmul.f32 %v355_v19, %v355_v19 }
  0x6b   : > { %361 = vst [vmem:[#allocation2] sm:$0xff] %v353_v17  ;;  %v390_v30 = vadd.s32 8, %v389_v15  ;;  %v381_v33 = vmul.f32 0.99, %v377_v22  ;;  %v382_v34 = vmul.f32 0.99, %v378_v23 }
  0x6c   : > { %364 = vst [vmem:[#allocation3] sm:$0xff] %v356_v25  ;;  %v427_v32 = vadd.f32 %v357_v26, %v356_v25  ;;  %v391_v35 = vadd.s32 16, %v389_v15  ;;  %v383_v36 = vmul.f32 0.99, %v379_v24  ;;  %v392_v37 = vadd.s32 24, %v389_v15 }
  0x6d   : > { %365 = vst [vmem:[#allocation3 + $0x18] sm:$0xff] %v357_v26  ;;  %v402_v40 = vmul.u32 128, %v389_v15  ;;  %v384_v41 = vadd.f32 0.01, %v380_v29  ;;  %v403_v42 = vmul.u32 128, %v390_v30 }
  0x6e   : > { %362 = vst [vmem:[#allocation2 + $0x18] sm:$0xff] %v354_v18  ;;  %v428_v39 = vadd.f32 %v427_v32, %v358_v27  ;;  %v404_v43 = vmul.u32 128, %v391_v35  ;;  %v405_v44 = vmul.u32 128, %v392_v37  ;;  %v385_v46 = vadd.f32 0.01, %v381_v33 }
  0x6f   : > { %366 = vst [vmem:[#allocation3 + $0x8] sm:$0xff] %v358_v27  ;;  %v386_v47 = vadd.f32 0.01, %v382_v34  ;;  %v406_v48 = vadd.s32 %v402_v40, %v394_v31  ;;  %v387_v49 = vadd.f32 0.01, %v383_v36  ;;  %v407_v50 = vadd.s32 %v403_v42, %v394_v31 }
  0x70   : > { %363 = vst [vmem:[#allocation2 + $0x8] sm:$0xff] %v355_v19  ;;  %v429_v45 = vadd.f32 %v428_v39, %v359_v28  ;;  %v408_v51 = vadd.s32 %v404_v43, %v394_v31  ;;  %v409_v52 = vadd.s32 %v405_v44, %v394_v31 }
  0x71   : > { %367 = vst [vmem:[#allocation3 + $0x10] sm:$0xff] %v359_v28  ;;  %vm410_vm0 = vcmp.lt.s32.totalorder %v406_v48, 256  ;;  %vm411_vm1 = vcmp.lt.s32.totalorder %v407_v50, 256 }
  0x72   : > { %v430_v53 = vadd.f32 %v429_v45, %v426_v38  ;;  %vm412_vm2 = vcmp.lt.s32.totalorder %v408_v51, 256  ;;  %vm413_vm3 = vcmp.lt.s32.totalorder %v409_v52, 256  ;;  %v959_v55 = vsel %vm410_vm0, 1.0, %v1358_v54 }
  0x73   : > { %v960_v56 = vsel %vm411_vm1, 1.0, %v1358_v54  ;;  %v961_v57 = vsel %vm412_vm2, 1.0, %v1358_v54  ;;  %v962_v58 = vsel %vm413_vm3, 1.0, %v1358_v54  ;;  %v422_v59 = vmul.f32 %v959_v55, %v384_v41 }
  0x74   : > { %431 = vst [vmem:[#allocation8] sm:$0xff] %v430_v53  ;;  %v423_v60 = vmul.f32 %v960_v56, %v385_v46  ;;  %v424_v61 = vmul.f32 %v961_v57, %v386_v47  ;;  %v425_v62 = vmul.f32 %v962_v58, %v387_v49 }
  0x75   : > { %v439_v63 = vmul.f32 %v422_v59, %v356_v25 }
  0x76   : > { %v434_v0 = vadd.f32 %v423_v60, %v422_v59  ;;  %v440_v1 = vmul.f32 %v423_v60, %v357_v26  ;;  %v441_v2 = vmul.f32 %v424_v61, %v358_v27  ;;  %v442_v3 = vmul.f32 %v425_v62, %v359_v28 }
  0x77   : > { %443 = vst [vmem:[#allocation4] sm:$0xff] %v439_v63 }
  0x78   : > { %v435_v4 = vadd.f32 %v434_v0, %v424_v61  ;;  %444 = vst [vmem:[#allocation4 + $0x8] sm:$0xff] %v440_v1 }
  0x79   : > { %445 = vst [vmem:[#allocation4 + $0x10] sm:$0xff] %v441_v2 }
  0x7a   : > { %v436_v6 = vadd.f32 %v435_v4, %v425_v62  ;;  %446 = vst [vmem:[#allocation4 + $0x18] sm:$0xff] %v442_v3 }
  0x7c   : > { %v437_v7 = vadd.f32 %v436_v6, %v433_v5 }
  0x7e   : > { %438 = vst [vmem:[#allocation8 + $0x8] sm:$0xff] %v437_v7 }
  0x7f PF: > { %s1783_s25 = sld [smem:[#allocation21_spill]]  ;;  %v447_v8 = vld [vmem:[%s1542_s7] sm:$0xff]  ;;  %v448_v9 = vld [vmem:[%s1542_s7 + $0x8] sm:$0xff]  ;;  %v449_v10 = vld [vmem:[%s1542_s7 + $0x10] sm:$0xff] }
  0x80   : > { %v450_v11 = vld [vmem:[%s1542_s7 + $0x18] sm:$0xff]  ;;  %v452_v13 = vld [vmem:[#allocation2] sm:$0xff]  ;;  %v453_v14 = vld [vmem:[#allocation2 + $0x18] sm:$0xff] }
  0x81   : > { %v451_v12 = vld [vmem:[#allocation2 + $0x10] sm:$0xff]  ;;  %v454_v15 = vld [vmem:[#allocation2 + $0x8] sm:$0xff]  ;;  %v1579_v17 = vmul.f32 %v452_v13, %v448_v9  ;;  %v1581_v18 = vmul.f32 %v453_v14, %v449_v10 }
  0x82   : > { %v1577_v16 = vmul.f32 %v451_v12, %v447_v8  ;;  %v1583_v19 = vmul.f32 %v454_v15, %v450_v11  ;;  %v580_v8 = vld [vmem:[%s1563_s24] sm:$0xff] }
  0x83   : > { %v464_v21 = vand.u32 2147483647, %v1579_v17  ;;  %v465_v22 = vand.u32 2147483647, %v1581_v18  ;;  %vm500_vm5 = vcmp.ge.f32.partialorder %v1579_v17, 0.0  ;;  %v552_v49 = vmin.f32 %v1579_v17, 0.0 }
  0x84   : > { %v463_v20 = vand.u32 2147483647, %v1577_v16  ;;  %v466_v23 = vand.u32 2147483647, %v1583_v19  ;;  %v551_v43 = vmin.f32 %v1577_v16, 0.0  ;;  %vm499_vm4 = vcmp.ge.f32.partialorder %v1577_v16, 0.0 }
  0x85   : > { %p601_p0 = scmp.eq.s32.totalorder %s1783_s25, 2  ;;  %v468_v25 = vsub.f32 0.0, %v464_v21  ;;  %v469_v26 = vsub.f32 0.0, %v465_v22  ;;  %vm501_vm6 = vcmp.ge.f32.partialorder %v1581_v18, 0.0  ;;  %v553_v53 = vmin.f32 %v1581_v18, 0.0  ;;  %v590_v17 = vld [vmem:[#allocation4 + $0x10] sm:$0xff] }
  0x86   : > { %v467_v24 = vsub.f32 0.0, %v463_v20  ;;  %v470_v27 = vsub.f32 0.0, %v466_v23  ;;  %vm502_vm7 = vcmp.ge.f32.partialorder %v1583_v19, 0.0  ;;  %v554_v57 = vmin.f32 %v1583_v19, 0.0 }
  0x87   : > { %v473_v29 = vmul.f32 1.442695, %v468_v25  ;;  %v475_v30 = vmul.f32 1.442695, %v469_v26 }
  0x88   : > { %v471_v28 = vmul.f32 1.442695, %v467_v24  ;;  %v477_v31 = vmul.f32 1.442695, %v470_v27  ;;  %v455_v24 = vld [vmem:[#allocation3] sm:$0xff] }
  0x8a   : > { %1112 = vpow2.f32 %v471_v28 }
  0x8b   : > { %1114 = vpow2.f32 %v473_v29  ;;  %v456_v29 = vld [vmem:[#allocation3 + $0x18] sm:$0xff] }
  0x8c   : > { %1116 = vpow2.f32 %v475_v30 }
  0x8d   : > { %1118 = vpow2.f32 %v477_v31 }
  0x90   : > { %v1589_v32 = vpop.eup %1112 }
  0x91   : > { %v1591_v33 = vpop.eup %1114  ;;  %v479_v34 = vadd.f32 1.0, %v1589_v32  ;;  %v518_v40 = vmul.f32 -0.5, %v1589_v32  ;;  %v521_v44 = vand.u32 2147483647, %v1589_v32 }
  0x92   : > { %v1594_v35 = vpop.eup %1116  ;;  %v480_v36 = vadd.f32 1.0, %v1591_v33  ;;  %v527_v41 = vmul.f32 -0.5, %v1591_v33  ;;  %v530_v45 = vand.u32 2147483647, %v1591_v33 }
  0x93   : > { %v1597_v37 = vpop.eup %1118  ;;  %v481_v38 = vadd.f32 1.0, %v1594_v35  ;;  %1120 = vrcp.f32 %v479_v34  ;;  %v536_v42 = vmul.f32 -0.5, %v1594_v35  ;;  %v519_v47 = vadd.f32 1.0, %v518_v40 }
  0x94   : > { %v482_v39 = vadd.f32 1.0, %v1597_v37  ;;  %1122 = vrcp.f32 %v480_v36  ;;  %v545_v46 = vmul.f32 -0.5, %v1597_v37  ;;  %v528_v48 = vadd.f32 1.0, %v527_v41 }
  0x95   : > { %1124 = vrcp.f32 %v481_v38  ;;  %v539_v51 = vand.u32 2147483647, %v1594_v35  ;;  %v548_v52 = vand.u32 2147483647, %v1597_v37  ;;  %v537_v56 = vadd.f32 1.0, %v536_v42  ;;  %v458_v42 = vld [vmem:[#allocation3 + $0x10] sm:$0xff] }
  0x96   : > { %1126 = vrcp.f32 %v482_v39  ;;  %vm1617_vm8 = vcmp.lt.f32.partialorder %v521_v44, 0.0004427343  ;;  %vm1621_vm9 = vcmp.lt.f32.partialorder %v530_v45, 0.0004427343  ;;  %v546_v62 = vadd.f32 1.0, %v545_v46 }
  0x97   : > { %1128 = vlog2.f32 %v479_v34  ;;  %v520_v2 = vmul.f32 %v1589_v32, %v519_v47  ;;  %v529_v3 = vmul.f32 %v1591_v33, %v528_v48  ;;  %vm1627_vm10 = vcmp.lt.f32.partialorder %v539_v51, 0.0004427343  ;;  %v588_v51 = vld [vmem:[#allocation4] sm:$0xff] }
  0x98   : > { %1130 = vlog2.f32 %v480_v36  ;;  %vm1631_vm11 = vcmp.lt.f32.partialorder %v548_v52, 0.0004427343  ;;  %v538_v13 = vmul.f32 %v1594_v35, %v537_v56  ;;  %v547_v22 = vmul.f32 %v1597_v37, %v546_v62  ;;  %v591_v62 = vld [vmem:[#allocation4 + $0x18] sm:$0xff] }
  0x99   : > { %v1121_v50 = vpop.eup %1120  ;;  %1132 = vlog2.f32 %v481_v38 }
  0x9a   : > { %v1123_v54 = vpop.eup %1122  ;;  %v487_v55 = vmul.f32 %v1121_v50, %v479_v34  ;;  %1134 = vlog2.f32 %v482_v39 }
  0x9b   : > { %v1125_v58 = vpop.eup %1124  ;;  %v488_v59 = vmul.f32 %v1123_v54, %v480_v36 }
  0x9c   : > { %v1127_v63 = vpop.eup %1126  ;;  %v489_v0 = vmul.f32 %v1125_v58, %v481_v38  ;;  %v491_v1 = vsub.f32 2.0, %v487_v55  ;;  %v457_v38 = vld [vmem:[#allocation3 + $0x8] sm:$0xff] }
  0x9d   : > { %v1129_v4 = vpop.eup %1128  ;;  %v490_v5 = vmul.f32 %v1127_v63, %v482_v39  ;;  %v492_v6 = vsub.f32 2.0, %v488_v59 }
  0x9e   : > { %v1131_v9 = vpop.eup %1130  ;;  %v493_v10 = vsub.f32 2.0, %v489_v0  ;;  %v495_v11 = vmul.f32 %v1121_v50, %v491_v1  ;;  %v517_v12 = vmul.f32 0.6931472, %v1129_v4 }
  0x9f   : > { %v1133_v14 = vpop.eup %1132  ;;  %v494_v15 = vsub.f32 2.0, %v490_v5  ;;  %v496_v20 = vmul.f32 %v1123_v54, %v492_v6  ;;  %v526_v21 = vmul.f32 0.6931472, %v1131_v9  ;;  %v589_v54 = vld [vmem:[#allocation4 + $0x8] sm:$0xff] }
  0xa0   : > { %v1135_v23 = vpop.eup %1134  ;;  %v497_v25 = vmul.f32 %v1125_v58, %v493_v10  ;;  %v503_v26 = vmul.f32 %v1589_v32, %v495_v11  ;;  %v523_v27 = vsel %vm1617_vm8, %v520_v2, %v517_v12  ;;  %v535_v28 = vmul.f32 0.6931472, %v1133_v14  ;;  %v587_v12 = vld [vmem:[%s1566_s12] sm:$0xff] }
  0xa1   : > { %v498_v30 = vmul.f32 %v1127_v63, %v494_v15  ;;  %v504_v31 = vmul.f32 %v1591_v33, %v496_v20  ;;  %v532_v34 = vsel %vm1621_vm9, %v529_v3, %v526_v21  ;;  %v544_v36 = vmul.f32 0.6931472, %v1135_v23 }
  0xa2   : > { %v505_v39 = vmul.f32 %v1594_v35, %v497_v25  ;;  %v507_v40 = vsel %vm499_vm4, %v503_v26, %v495_v11  ;;  %v541_v32 = vsel %vm1627_vm10, %v538_v13, %v535_v28  ;;  %v555_v41 = vsub.f32 %v523_v27, %v551_v43  ;;  %v569_v13 = vld [vmem:[%s1559_s5] sm:$0xff]  ;;  %v623_v27 = vld [vmem:[#allocation8 + $0x8] sm:$0xff] (%p601_p0) }
  0xa3   : > { %v506_v44 = vmul.f32 %v1597_v37, %v498_v30  ;;  %v508_v33 = vsel %vm500_vm5, %v504_v31, %v496_v20  ;;  %v511_v45 = vmul.f32 %v507_v40, %v455_v24  ;;  %v550_v46 = vsel %vm1631_vm11, %v547_v22, %v544_v36  ;;  %v611_v24 = vld [vmem:[#allocation8] sm:$0xff] (%p601_p0) }
  0xa4   : > { %v509_v35 = vsel %vm501_vm6, %v505_v39, %v497_v25  ;;  %v512_v47 = vmul.f32 %v508_v33, %v456_v29  ;;  %v556_v48 = vsub.f32 %v532_v34, %v552_v49  ;;  %v557_v50 = vsub.f32 %v541_v32, %v553_v53  ;;  %612 = vadd.xlane.f32.xlu0 (%p601_p0), %v611_v24 }
  0xa5   : > { %v510_v16 = vsel %vm502_vm7, %v506_v44, %v498_v30  ;;  %v513_v43 = vmul.f32 %v509_v35, %v457_v38  ;;  %v558_v52 = vsub.f32 %v550_v46, %v554_v57  ;;  %v559_v37 = vmin.f32 %v555_v41, 27.631021 }
  0xa6   : > { %v514_v55 = vmul.f32 %v510_v16, %v458_v42  ;;  %v560_v56 = vmin.f32 %v556_v48, 27.631021  ;;  %v561_v58 = vmin.f32 %v557_v50, 27.631021  ;;  %v563_v59 = vmul.f32 %v511_v45, %v511_v45 }
  0xa7   : > { %v562_v60 = vmin.f32 %v558_v52, 27.631021  ;;  %v564_v61 = vmul.f32 %v512_v47, %v512_v47  ;;  %v565_v18 = vmul.f32 %v513_v43, %v513_v43  ;;  %v592_v49 = vmul.f32 %v588_v51, %v555_v41 }
  0xa8   : > { %v566_v53 = vmul.f32 %v514_v55, %v514_v55  ;;  %v570_v63 = vmul.f32 %v563_v59, %v559_v37  ;;  %v593_v19 = vmul.f32 %v589_v54, %v556_v48  ;;  %v594_v0 = vmul.f32 %v590_v17, %v557_v50 }
  0xa9   : > { %v571_v57 = vmul.f32 %v564_v61, %v560_v56  ;;  %v572_v1 = vmul.f32 %v565_v18, %v561_v58  ;;  %v581_v2 = vadd.f32 %v564_v61, %v563_v59  ;;  %v595_v3 = vmul.f32 %v591_v62, %v558_v52 }
  0xaa   : > { %v596_v4 = vadd.f32 %v593_v19, %v592_v49  ;;  %v573_v5 = vmul.f32 %v566_v53, %v562_v60 }
  0xab   : > { %v574_v6 = vadd.f32 %v571_v57, %v570_v63  ;;  %v582_v7 = vadd.f32 %v581_v2, %v565_v18 }
  0xac   : > { %v597_v9 = vadd.f32 %v596_v4, %v594_v0  ;;  %624 = vadd.xlane.f32.xlu0 (%p601_p0), %v623_v27 }
  0xad   : > { %v575_v10 = vadd.f32 %v574_v6, %v572_v1  ;;  %v583_v11 = vadd.f32 %v582_v7, %v566_v53 }
  0xae   : > { %v598_v14 = vadd.f32 %v597_v9, %v595_v3 }
  0xaf   : > { %v576_v15 = vadd.f32 %v575_v10, %v573_v5  ;;  %v584_v20 = vadd.f32 %v583_v11, %v580_v8  ;;  %605 = sbr.rel (!%p601_p0) target bundleno = 392 (0x188), region = 60 }
  0xb0   : > { %v599_v21 = vadd.f32 %v598_v14, %v587_v12 }
  0xb1   : > { %v577_v22 = vadd.f32 %v576_v15, %v569_v13  ;;  %585 = vst [vmem:[%s1563_s24] sm:$0xff] %v584_v20 }
  0xb2   : > { %600 = vst [vmem:[%s1566_s12] sm:$0xff] %v599_v21 }
  0xb3   : > { %578 = vst [vmem:[%s1559_s5] sm:$0xff] %v577_v22 }
  0xb8   : > { %v654_v26 = vld [vmem:[#allocation6] sm:$0xff]  ;;  %v697_v30 = vld [vmem:[#allocation6 + $0x8] sm:$0xff]  ;;  %v740_v36 = vld [vmem:[#allocation6 + $0x10] sm:$0xff] }
  0xb9   : > { %v668_v25 = vld [vmem:[#allocation7] sm:$0xff]  ;;  %v711_v29 = vld [vmem:[#allocation7 + $0x8] sm:$0xff]  ;;  %698 = vadd.xlane.f32.xlu0 %v697_v30  ;;  %v754_v34 = vld [vmem:[#allocation7 + $0x10] sm:$0xff] }
  0xba   : > { %v640_v23 = vld [vmem:[#allocation5] sm:$0xff]  ;;  %669 = vadd.xlane.f32.xlu2 %v668_v25  ;;  %v683_v28 = vld [vmem:[#allocation5 + $0x8] sm:$0xff]  ;;  %v726_v31 = vld [vmem:[#allocation5 + $0x10] sm:$0xff] }
  0xbb   : > { %641 = vadd.xlane.f32.xlu1 %v640_v23 }
  0xc1   : > { %741 = vadd.xlane.f32.xlu0 %v740_v36 }
  0xc2   : > { %684 = vadd.xlane.f32.xlu2 %v683_v28 }
  0xc3   : > { %655 = vadd.xlane.f32.xlu1 %v654_v26 }
  0xca   : > { %727 = vadd.xlane.f32.xlu2 %v726_v31 }
  0xcb   : > { %712 = vadd.xlane.f32.xlu1 %v711_v29 }
  0xd3   : > { %755 = vadd.xlane.f32.xlu1 %v754_v34 }
 0x117   : > { %v613_v39 = vpop.xlane.xlu0 %612 }
 0x118   : > { %v614_v32 = vrot.slane %v613_v39, 4 }
 0x11a   : > { %v615_v44 = vadd.f32 %v614_v32, %v613_v39 }
 0x11c   : > { %v616_v45 = vrot.slane %v615_v44, 2 }
 0x11e   : > { %v617_v35 = vadd.f32 %v616_v45, %v615_v44 }
 0x11f   : > { %v625_v50 = vpop.xlane.xlu0 %624 }
 0x120   : > { %v626_v16 = vrot.slane %v625_v50, 4  ;;  %v618_v52 = vrot.slane %v617_v35, 1 }
 0x122   : > { %v627_v55 = vadd.f32 %v626_v16, %v625_v50  ;;  %v619_v56 = vadd.f32 %v618_v52, %v617_v35  ;;  %v606_v50 = vlaneseq }
 0x124   : > { %v628_v61 = vrot.slane %v627_v55, 2  ;;  %973 = vpush %v619_v56  ;;  %v609_v16 = vand.u32 127, %v606_v50 }
 0x126   : > { %v629_v49 = vadd.f32 %v628_v61, %v627_v55  ;;  %vm637_vm12 = vcmp.eq.s32.totalorder %v609_v16, 0  ;;  %vm680_vm5 = vcmp.eq.s32.totalorder %v609_v16, 1  ;;  %vm723_vm9 = vcmp.eq.s32.totalorder %v609_v16, 2 }
 0x128   : > { %v630_v4 = vrot.slane %v629_v49, 1 }
 0x12a   : > { %v631_v11 = vadd.f32 %v630_v4, %v629_v49 }
 0x12c   : > { %v699_v19 = vpop.xlane.xlu0 %698  ;;  %975 = vpush %v631_v11 }
 0x12d   : > { %v670_v41 = vpop.xlane.xlu2 %669  ;;  %v700_v2 = vrot.slane %v699_v19, 4 }
 0x12e   : > { %v642_v38 = vpop.xlane.xlu1 %641  ;;  %v671_v42 = vrot.slane %v670_v41, 4 }
 0x12f   : > { %v643_v40 = vrot.slane %v642_v38, 4  ;;  %v701_v10 = vadd.f32 %v700_v2, %v699_v19 }
 0x130   : > { %v672_v46 = vadd.f32 %v671_v42, %v670_v41 }
 0x131   : > { %v644_v33 = vadd.f32 %v643_v40, %v642_v38  ;;  %v702_v20 = vrot.slane %v701_v10, 2 }
 0x132   : > { %v673_v37 = vrot.slane %v672_v46, 2 }
 0x133   : > { %v645_v47 = vrot.slane %v644_v33, 2  ;;  %v703_v24 = vadd.f32 %v702_v20, %v701_v10 }
 0x134   : > { %v674_v62 = vadd.f32 %v673_v37, %v672_v46  ;;  %v742_v28 = vpop.xlane.xlu0 %741 }
 0x135   : > { %v685_v43 = vpop.xlane.xlu2 %684  ;;  %v646_v59 = vadd.f32 %v645_v47, %v644_v33  ;;  %v743_v30 = vrot.slane %v742_v28, 4  ;;  %v704_v31 = vrot.slane %v703_v24, 1 }
 0x136   : > { %v656_v48 = vpop.xlane.xlu1 %655  ;;  %v686_v54 = vrot.slane %v685_v43, 4  ;;  %v675_v7 = vrot.slane %v674_v62, 1 }
 0x137   : > { %v657_v51 = vrot.slane %v656_v48, 4  ;;  %v647_v0 = vrot.slane %v646_v59, 1  ;;  %v744_v39 = vadd.f32 %v743_v30, %v742_v28  ;;  %v705_v40 = vadd.f32 %v704_v31, %v703_v24 }
 0x138   : > { %v687_v58 = vadd.f32 %v686_v54, %v685_v43  ;;  %v676_v23 = vadd.f32 %v675_v7, %v674_v62 }
 0x139   : > { %v658_v17 = vadd.f32 %v657_v51, %v656_v48  ;;  %v648_v14 = vadd.f32 %v647_v0, %v646_v59  ;;  %v745_v44 = vrot.slane %v744_v39, 2  ;;  %v607_v51 = vshrl.u32 %v606_v50, 7 }
 0x13a   : > { %v688_v18 = vrot.slane %v687_v58, 2 }
 0x13b   : > { %v659_v60 = vrot.slane %v658_v17, 2  ;;  %977 = vpush %v648_v14  ;;  %v746_v45 = vadd.f32 %v745_v44, %v744_v39  ;;  %vm638_vm13 = vcmp.eq.s32.totalorder %v607_v51, 0  ;;  %vm621_vm14 = vcmp.eq.s32.totalorder %v607_v51, 4 }
 0x13c   : > { %v689_v57 = vadd.f32 %v688_v18, %v687_v58  ;;  %vm652_vm15 = vcmp.eq.s32.totalorder %v607_v51, 1  ;;  %vm610_vm0 = vcmp.eq.s32.totalorder %v607_v51, 3  ;;  %vm639_vm1 = vmand %vm637_vm12, %vm638_vm13  ;;  %vm666_vm2 = vcmp.eq.s32.totalorder %v607_v51, 2 }
 0x13d   : > { %v660_v53 = vadd.f32 %v659_v60, %v658_v17  ;;  %v728_v3 = vpop.xlane.xlu2 %727  ;;  %v747_v46 = vrot.slane %v746_v45, 1  ;;  %vm653_vm3 = vmand %vm637_vm12, %vm652_vm15 }
 0x13e   : > { %v713_v63 = vpop.xlane.xlu1 %712  ;;  %v729_v6 = vrot.slane %v728_v3, 4  ;;  %v690_v8 = vrot.slane %v689_v57, 1  ;;  %vm667_vm4 = vmand %vm637_vm12, %vm666_vm2 }
 0x13f   : > { %v714_v1 = vrot.slane %v713_v63, 4  ;;  %v661_v5 = vrot.slane %v660_v53, 1  ;;  %v748_v47 = vadd.f32 %v747_v46, %v746_v45  ;;  %vm681_vm6 = vmand %vm680_vm5, %vm638_vm13 }
 0x140   : > { %v730_v13 = vadd.f32 %v729_v6, %v728_v3  ;;  %v691_v21 = vadd.f32 %v690_v8, %v689_v57  ;;  %vm695_vm7 = vmand %vm680_vm5, %vm652_vm15 }
 0x141   : > { %v715_v9 = vadd.f32 %v714_v1, %v713_v63  ;;  %v662_v12 = vadd.f32 %v661_v5, %v660_v53  ;;  %vm709_vm8 = vmand %vm680_vm5, %vm666_vm2 }
 0x142   : > { %v731_v22 = vrot.slane %v730_v13, 2  ;;  %vm724_vm10 = vmand %vm723_vm9, %vm638_vm13 }
 0x143   : > { %v716_v15 = vrot.slane %v715_v9, 2  ;;  %979 = vpush %v662_v12  ;;  %vm738_vm11 = vmand %vm723_vm9, %vm652_vm15 }
 0x144   : > { %v732_v26 = vadd.f32 %v731_v22, %v730_v13  ;;  %981 = vpush %v676_v23  ;;  %vm752_vm12 = vmand %vm723_vm9, %vm666_vm2 }
 0x145   : > { %v717_v25 = vadd.f32 %v716_v15, %v715_v9  ;;  %983 = vpush %v691_v21 }
 0x146   : > { %v756_v27 = vpop.xlane.xlu1 %755  ;;  %v733_v36 = vrot.slane %v732_v26, 1  ;;  %985 = vpush %v705_v40 }
 0x147   : > { %v757_v29 = vrot.slane %v756_v27, 4  ;;  %v718_v34 = vrot.slane %v717_v25, 1 }
 0x148   : > { %v734_v41 = vadd.f32 %v733_v36, %v732_v26 }
 0x149   : > { %v758_v38 = vadd.f32 %v757_v29, %v756_v27  ;;  %v719_v32 = vadd.f32 %v718_v34, %v717_v25 }
 0x14b   : > { %v759_v42 = vrot.slane %v758_v38, 2  ;;  %987 = vpush %v719_v32 }
 0x14c   : > { %989 = vpush %v734_v41 }
 0x14d   : > { %v760_v33 = vadd.f32 %v759_v42, %v758_v38  ;;  %991 = vpush %v748_v47 }
 0x14f   : > { %v761_v35 = vrot.slane %v760_v33, 1 }
 0x151   : > { %v762_v48 = vadd.f32 %v761_v35, %v760_v33 }
 0x153   : > { %993 = vpush %v762_v48 }
 0x155   : > { %s974_s18 = spop %973 }
 0x156   : > { %v635_v52 = vstv %s974_s18 }
 0x15d   : > { %s976_s19 = spop %975 }
 0x15e   : > { %v633_v43 = vstv %s976_s19 }
 0x15f   : > { %v634_v37 = vsel %vm621_vm14, %v633_v43, 0.0 }
 0x160   : > { %v636_v54 = vsel %vm610_vm0, %v635_v52, %v634_v37 }
 0x16c   : > { %s978_s20 = spop %977 }
 0x16d   : > { %v650_v17 = vstv %s978_s20 }
 0x16e   : > { %v651_v55 = vsel %vm639_vm1, %v650_v17, %v636_v54 }
 0x174   : > { %s980_s8 = spop %979 }
 0x175   : > { %s982_s7 = spop %981  ;;  %v664_v56 = vstv %s980_s8 }
 0x176   : > { %v665_v58 = vsel %vm653_vm3, %v664_v56, %v651_v55  ;;  %v678_v59 = vstv %s982_s7  ;;  %s984_s13 = spop %983 }
 0x177   : > { %v679_v60 = vsel %vm667_vm4, %v678_v59, %v665_v58  ;;  %s986_s22 = spop %985  ;;  %v693_v61 = vstv %s984_s13 }
 0x178   : > { %v707_v18 = vstv %s986_s22  ;;  %v694_v62 = vsel %vm681_vm6, %v693_v61, %v679_v60 }
 0x179   : > { %v708_v49 = vsel %vm695_vm7, %v707_v18, %v694_v62 }
 0x17c   : > { %s988_s15 = spop %987 }
 0x17d   : > { %v721_v53 = vstv %s988_s15  ;;  %s990_s26 = spop %989 }
 0x17e   : > { %v722_v63 = vsel %vm709_vm8, %v721_v53, %v708_v49  ;;  %v736_v19 = vstv %s990_s26  ;;  %s992_s23 = spop %991 }
 0x17f   : > { %v737_v0 = vsel %vm724_vm10, %v736_v19, %v722_v63  ;;  %v750_v57 = vstv %s992_s23 }
 0x180   : > { %v751_v1 = vsel %vm738_vm11, %v750_v57, %v737_v0 }
 0x184   : > { %s994_s9 = spop %993 }
 0x185   : > { %v764_v2 = vstv %s994_s9 }
 0x186   : > { %v765_v3 = vsel %vm752_vm12, %v764_v2, %v751_v1 }
 0x187   : > { %766 = vst [vmem:[%s1569_s3] sm:$0xff] %v765_v3 }
 0x188 PF: > { %s1792_s10 = sld [smem:[#allocation22_spill]]  ;;  %s781_s4 = sshll.u32 %s1569_s3, 4  ;;  %s782_s4 = int_to_ptr.vmem [resolvable:$true] %s781_s4 }
 0x189   : > { %s1794_s24 = sld [smem:[#allocation32_spill]]  ;;  %s768_s25 = scalar_lea.sflag [#allocation11], %s1550_s1 }
 0x18e   : > { %s966_s27 = sshll.u32 %s1792_s10, 3 }
 0x18f   : > { %s779_s12 = scalar_lea.hbm %s1794_s24, %s966_s27  ;;  %s1246_s7 = scalar_lea.hbm %s1794_s24, 16 }
 0x190   : > { %s783_s30 = sshll.u32 %s779_s12, 4  ;;  %s784_s30 = int_to_ptr.hbm [resolvable:$true] %s783_s30 }
 0x191   : > { %s1240_s18 = sshra.s32 %s784_s30, 4  ;;  %s1241_s18 = int_to_ptr.hbm [resolvable:$true] %s1240_s18 }
 0x192   : > { %s1242_s19 = scalar_lea.hbm %s1241_s18, 8  ;;  %p1247_p4 = scmp.lt.s32.totalorder %s1241_s18, %s1794_s24 }
 0x193   : > { %p1243_p1 = scmp.ne.s32.totalorder %s1241_s18, %s1242_s19  ;;  %p1248_p5 = scmp.lt.s32.totalorder %s1246_s7, %s1242_s19 }
 0x195   : > { %p1244_p2 = pnand %p1243_p1, %p1463_p12  ;;  %p1249_p7 = por %p1248_p5, %p1247_p4 }
 0x197   : > { %p1245_p3 = pneg %p1244_p2 }
 0x199   : > { %p1250_p8 = pnand %p1249_p7, %p1245_p3 }
 0x19b   : > { %1253 = shalt.err (!%p1250_p8)
}
 0x19c   : > { %1001 = dma.vmem_to_hbm [thread:$0]  (%p1463_p12), %s782_s4, 128, %s784_s30, %s768_s25  }
 0x19d PF: > { %s1795_s1 = sld [smem:[#allocation24_spill]] }
 0x19e   : > { %s1796_s3 = sld [smem:[#allocation19_spill]] }
 0x1a3   : > { %p1018_p9 = scmp.ge.s32.totalorder %s1795_s1, 2 }
 0x1a4   : > { %s795_s26 = sand.u32 1, %s1796_s3  }
 0x1a5   : > { %p1014_p11 = pnand %p1018_p9, %p1467_p13  ;;  %s796_s23 = scalar_lea.sflag [#allocation11], %s795_s26 }
 0x1a7   : > { %p1015_p6 = pneg %p1014_p11 }
 0x1a9   : > { %1307 = dma.done.wait (%p1015_p6), %s796_s23, 128  }
 0x1aa   : > { %1309 = vsyncadd (%p1015_p6), %s796_s23, 4294967168  ;;  %s22_s22 = sadd.s32 1, %s1795_s1   ;;  %s1798_s12 = sld [smem:[#allocation20_spill]] }
 0x1ab   : > { %p19_p10 = scmp.ge.s32.totalorder %s22_s22, 8   ;;  %s1799_s18 = sld [smem:[#allocation23_spill]] }
 0x1ac   : > { %s1800_s20 = sld [smem:[#allocation29_spill]]  ;;  %s1802_s13 = smov %s1320_s14 }
 0x1ad   : > { %s1801_s9 = sld [smem:[#allocation30_spill]]  ;;  %s1803_s14 = smov %s1524_s28 }
 0x1ae   : > { %s1804_s15 = smov %s1328_s16  ;;  %s1805_s16 = smov %s1332_s17 }
 0x1af   : > { %s1806_s17 = smov %s1527_s29  ;;  %s1807_s19 = smov %s1348_s21 }
 0x1b0   :  { %21 = sbr.rel (!%p19_p10) target bundleno = 14 (0xe), region = 131 }
 0x1b3   : > { %s1808_s21 = smov %s1801_s9 }
 0x1b5   :  { %802 = vsyncpa [#allocation10], 1 }
 0x1b6   :  { %804 = vsyncpa [#allocation10 + $0x1], 1 }
 0x1b7   :  { %805 = vsyncpa [#allocation13], 1 }
 0x1b8   :  { %807 = vsyncpa [#allocation13 + $0x1], 1 }
 0x1b9   :  { %808 = vsyncpa [#allocation11], 1 }
 0x1ba   :  { %810 = vsyncpa [#allocation11 + $0x1], 1 }

</bundles_post_ra>
